<compile_context>
chip_gen: v5e
topology: v5e:2x2
jax: 0.10.0
libtpu: 0.0.40
codegen_flags: <defaults>
</compile_context>

<pallas_src>
import math
from functools import partial

import jax
import jax.numpy as jnp
from jax import lax
from jax.experimental import pallas as pl
from jax.experimental.pallas import tpu as pltpu


# ------------------------------ fused kernel ------------------------------

def _cross_attn_kernel(x_ref, enc_ref, wq_ref, bq_ref, wkv_ref, bkv_ref,
                       wp_ref, bp_ref,
                       out_ref, query_ref, key_ref,
                       q_sc, m_sc, l_sc, acc_sc,
                       *, n_head, scale):
    C = wq_ref.shape[0]
    hd = C // n_head
    kv_i = pl.program_id(1)
    n_kv = pl.num_programs(1)

    # ---- once per batch element: query projection + state init -------------
    @pl.when(kv_i == 0)
    def _init():
        q = jnp.dot(x_ref[0].astype(jnp.bfloat16), wq_ref[...],
                    preferred_element_type=jnp.float32) + bq_ref[...]
        query_ref[0] = q                      # second returned value
        q_sc[...] = q.astype(jnp.bfloat16)    # reused for every KV tile
        m_sc[...] = jnp.full_like(m_sc, -jnp.inf)
        l_sc[...] = jnp.zeros_like(l_sc)
        acc_sc[...] = jnp.zeros_like(acc_sc)

    # ---- every KV tile: fused K/V projection on this encoder block ---------
    kv = jnp.dot(enc_ref[0].astype(jnp.bfloat16), wkv_ref[...],
                 preferred_element_type=jnp.float32) + bkv_ref[...]   # (tkv, 2C)
    k_t = kv[:, :C]
    v_t = kv[:, C:]
    key_ref[0] = k_t                          # third returned value
    k_bf = k_t.astype(jnp.bfloat16)
    v_bf = v_t.astype(jnp.bfloat16)
    q_all = q_sc[...]                         # (T, C) bf16

    # ---- flash-style online-softmax update, per head (static unroll) -------
    for h in range(n_head):
        sl = slice(h * hd, (h + 1) * hd)
        s = lax.dot_general(q_all[:, sl], k_bf[:, sl],
                            (((1,), (1,)), ((), ())),
                            preferred_element_type=jnp.float32) * scale   # (T, tkv)
        m_prev = m_sc[h]                                                   # (T, 1)
        m_new = jnp.maximum(m_prev, jnp.max(s, axis=-1, keepdims=True))
        alpha = jnp.exp(m_prev - m_new)
        p = jnp.exp(s - m_new)
        l_sc[h] = alpha * l_sc[h] + jnp.sum(p, axis=-1, keepdims=True)
        acc_sc[h] = alpha * acc_sc[h] + jnp.dot(
            p.astype(jnp.bfloat16), v_bf[:, sl],
            preferred_element_type=jnp.float32)
        m_sc[h] = m_new

    # ---- last KV tile: normalize + fused output projection -----------------
    @pl.when(kv_i == n_kv - 1)
    def _finalize():
        T = out_ref.shape[1]
        o = jnp.zeros((T, C), jnp.float32)
        for h in range(n_head):
            sl = slice(h * hd, (h + 1) * hd)
            y_h = acc_sc[h] * pl.reciprocal(l_sc[h], approx=True)     # (T, hd)
            o = o + jnp.dot(y_h.astype(jnp.bfloat16), wp_ref[sl, :],
                            preferred_element_type=jnp.float32)
        out_ref[0] = o + bp_ref[...]


# ------------------------------ host wrapper -------------------------------

def cross_attention(x, encoder_output, params, n_head,
                    *, kv_block=512, vmem_limit_bytes=32 * 1024 * 1024):
    """Returns (c_proj(attention(x, enc)), query, key) — same as the torch module."""
    B, T, C = x.shape
    S = encoder_output.shape[1]
    assert C % n_head == 0
    hd = C // n_head

    # KV tile: full S if small, otherwise a 512-row stream (multiple of 8).
    tkv = S if S <= kv_block else kv_block
    assert S % tkv == 0, "S must be a multiple of the KV tile size"
    n_kv = S // tkv

    # bf16 weights for the MXU (f32 accumulation inside the kernel);
    # K and V projections fused into one C -> 2C matmul.
    wq = params["wq"].astype(jnp.bfloat16)
    wkv = jnp.concatenate([params["wk"], params["wv"]], axis=1).astype(jnp.bfloat16)
    wp = params["wp"].astype(jnp.bfloat16)
    bq = params["bq"].reshape(1, C).astype(jnp.float32)
    bkv = jnp.concatenate([params["bk"], params["bv"]]).reshape(1, 2 * C).astype(jnp.float32)
    bp = params["bp"].reshape(1, C).astype(jnp.float32)

    flops = 2 * B * (T * C * C            # q proj
                     + S * C * (2 * C)    # fused k/v proj
                     + 2 * n_head * T * S * hd   # scores + p@v
                     + T * C * C)         # c_proj
    transcendentals = B * n_head * T * (S + 2 * n_kv)   # exp + alpha + recip
    bytes_accessed = (4 * (x.size + encoder_output.size
                           + 2 * B * T * C + B * S * C)
                      + 2 * (wq.size + wkv.size + wp.size)
                      + 4 * (bq.size + bkv.size + bp.size))

    kernel = partial(_cross_attn_kernel, n_head=n_head, scale=1.0 / math.sqrt(hd))

    out, query, key = pl.pallas_call(
        kernel,
        out_shape=(jax.ShapeDtypeStruct((B, T, C), jnp.float32),
                   jax.ShapeDtypeStruct((B, T, C), jnp.float32),
                   jax.ShapeDtypeStruct((B, S, C), jnp.float32)),
        grid_spec=pltpu.PrefetchScalarGridSpec(
            num_scalar_prefetch=0,
            grid=(B, n_kv),
            in_specs=[
                pl.BlockSpec((1, T, C), lambda b, s: (b, 0, 0)),     # x
                pl.BlockSpec((1, tkv, C), lambda b, s: (b, s, 0)),   # encoder tile
                pl.BlockSpec((C, C), lambda b, s: (0, 0)),           # Wq (bf16)
                pl.BlockSpec((1, C), lambda b, s: (0, 0)),           # bq
                pl.BlockSpec((C, 2 * C), lambda b, s: (0, 0)),       # Wkv (bf16)
                pl.BlockSpec((1, 2 * C), lambda b, s: (0, 0)),       # bkv
                pl.BlockSpec((C, C), lambda b, s: (0, 0)),           # Wproj (bf16)
                pl.BlockSpec((1, C), lambda b, s: (0, 0)),           # bproj
            ],
            out_specs=[
                pl.BlockSpec((1, T, C), lambda b, s: (b, 0, 0)),     # c_proj output
                pl.BlockSpec((1, T, C), lambda b, s: (b, 0, 0)),     # query
                pl.BlockSpec((1, tkv, C), lambda b, s: (b, s, 0)),   # key
            ],
            scratch_shapes=[
                pltpu.VMEM((T, C), jnp.bfloat16),          # q (bf16, reused per KV tile)
                pltpu.VMEM((n_head, T, 1), jnp.float32),   # running max m
                pltpu.VMEM((n_head, T, 1), jnp.float32),   # running sum l
                pltpu.VMEM((n_head, T, hd), jnp.float32),  # running accumulator
            ],
        ),
        compiler_params=pltpu.CompilerParams(
            dimension_semantics=("parallel", "arbitrary"),
            vmem_limit_bytes=vmem_limit_bytes),
        cost_estimate=pl.CostEstimate(flops=int(flops),
                                      transcendentals=int(transcendentals),
                                      bytes_accessed=int(bytes_accessed)),
    )(x, encoder_output, wq, bq, wkv, bkv, wp, bp)
    return out, query, key


# ------------------------------ reference / setup ---------------------------

def reference_forward(x, enc, params, n_head):
    B, T, C = x.shape
    S = enc.shape[1]
    hd = C // n_head
    q = x @ params["wq"] + params["bq"]
    k = enc @ params["wk"] + params["bk"]
    v = enc @ params["wv"] + params["bv"]
    qh = q.reshape(B, T, n_head, hd).transpose(0, 2, 1, 3)
    kh = k.reshape(B, S, n_head, hd).transpose(0, 2, 1, 3)
    vh = v.reshape(B, S, n_head, hd).transpose(0, 2, 1, 3)
    att = (qh @ kh.transpose(0, 1, 3, 2)) * (1.0 / math.sqrt(hd))
    att = jax.nn.softmax(att, axis=-1)
    y = (att @ vh).transpose(0, 2, 1, 3).reshape(B, T, C)
    return y @ params["wp"] + params["bp"], q, k


def init_params(key, C):
    ks = jax.random.split(key, 8)
    mk_w = lambda k: 0.02 * jax.random.normal(k, (C, C), jnp.float32)
    mk_b = lambda k: 0.01 * jax.random.normal(k, (C,), jnp.float32)
    return {"wq": mk_w(ks[0]), "bq": mk_b(ks[1]),
            "wk": mk_w(ks[2]), "bk": mk_b(ks[3]),
            "wv": mk_w(ks[4]), "bv": mk_b(ks[5]),
            "wp": mk_w(ks[6]), "bp": mk_b(ks[7])}


# ----------------------------------- main -----------------------------------

if __name__ == "__main__":
    class Cfg:
        n_embd = 32
        n_head = 4

    cfg = Cfg()
    B, T, S, C = 2, 8, 8, cfg.n_embd

    root = jax.random.PRNGKey(0)
    kx, ke, kp = jax.random.split(root, 3)
    x = jax.random.normal(kx, (B, T, C), jnp.float32)
    enc = jax.random.normal(ke, (B, S, C), jnp.float32)
    params = init_params(kp, C)

    fwd = jax.jit(partial(cross_attention, n_head=cfg.n_head))
    out, query, key = jax.block_until_ready(fwd(x, enc, params))

    assert out.shape == (B, T, C)
    assert query.shape == (B, T, C)
    assert key.shape == (B, S, C)
    assert bool(jnp.all(jnp.isfinite(out)))

    # correctness vs pure-JAX f32 reference (loose tol: bf16 MXU + approx recip)
    out_r, q_r, k_r = reference_forward(x, enc, params, cfg.n_head)
    assert bool(jnp.allclose(out, out_r, atol=2e-2, rtol=2e-2))
    assert bool(jnp.allclose(query, q_r, atol=2e-2, rtol=2e-2))
    assert bool(jnp.allclose(key, k_r, atol=2e-2, rtol=2e-2))

    print("KERNEL_OK")
</pallas_src>

<mosaic_0001>
module attributes {stable_mosaic.version = 11 : i64} {
  func.func @_cross_attn_kernel(%arg0: i32, %arg1: i32, %arg2: memref<1x8x32xf32, #tpu.memory_space<vmem>>, %arg3: memref<1x8x32xf32, #tpu.memory_space<vmem>>, %arg4: memref<32x32xbf16, #tpu.memory_space<vmem>>, %arg5: memref<1x32xf32, #tpu.memory_space<vmem>>, %arg6: memref<32x64xbf16, #tpu.memory_space<vmem>>, %arg7: memref<1x64xf32, #tpu.memory_space<vmem>>, %arg8: memref<32x32xbf16, #tpu.memory_space<vmem>>, %arg9: memref<1x32xf32, #tpu.memory_space<vmem>>, %arg10: memref<1x8x32xf32, #tpu.memory_space<vmem>>, %arg11: memref<1x8x32xf32, #tpu.memory_space<vmem>>, %arg12: memref<1x8x32xf32, #tpu.memory_space<vmem>>, %arg13: memref<8x32xbf16, #tpu.memory_space<vmem>>, %arg14: memref<4x8x1xf32, #tpu.memory_space<vmem>>, %arg15: memref<4x8x1xf32, #tpu.memory_space<vmem>>, %arg16: memref<4x8x8xf32, #tpu.memory_space<vmem>>) attributes {dimension_semantics = [#tpu.dimension_semantics<parallel>, #tpu.dimension_semantics<arbitrary>], iteration_bounds = array<i64: 2, 1>, scalar_prefetch = 0 : i64, scratch_operands = 4 : i64, tpu.core_type = #tpu.core_type<tc>, window_params = [{transform_indices = @transform_0, window_bounds = array<i64: 1, 8, 32>}, {transform_indices = @transform_1, window_bounds = array<i64: 1, 8, 32>}, {pipeline_mode = #tpu.pipeline_mode<synchronous>, transform_indices = @transform_2, window_bounds = array<i64: 32, 32>}, {pipeline_mode = #tpu.pipeline_mode<synchronous>, transform_indices = @transform_3, window_bounds = array<i64: 1, 32>}, {pipeline_mode = #tpu.pipeline_mode<synchronous>, transform_indices = @transform_4, window_bounds = array<i64: 32, 64>}, {pipeline_mode = #tpu.pipeline_mode<synchronous>, transform_indices = @transform_5, window_bounds = array<i64: 1, 64>}, {pipeline_mode = #tpu.pipeline_mode<synchronous>, transform_indices = @transform_6, window_bounds = array<i64: 32, 32>}, {pipeline_mode = #tpu.pipeline_mode<synchronous>, transform_indices = @transform_7, window_bounds = array<i64: 1, 32>}, {transform_indices = @transform_8, window_bounds = array<i64: 1, 8, 32>}, {transform_indices = @transform_9, window_bounds = array<i64: 1, 8, 32>}, {transform_indices = @transform_10, window_bounds = array<i64: 1, 8, 32>}]} {
    %c0_i32 = arith.constant 0 : i32
    %0 = arith.cmpi eq, %arg1, %c0_i32 : i32
    %1 = arith.extui %0 : i1 to i32
    %c0_i32_0 = arith.constant 0 : i32
    %2 = arith.cmpi ne, %1, %c0_i32_0 : i32
    scf.if %2 {
      %c0_103 = arith.constant 0 : index
      %c0_104 = arith.constant 0 : index
      %c0_105 = arith.constant 0 : index
      %174 = vector.load %arg2[%c0_103, %c0_104, %c0_105] : memref<1x8x32xf32, #tpu.memory_space<vmem>>, vector<1x8x32xf32>
      %175 = vector.shape_cast %174 : vector<1x8x32xf32> to vector<8x32xf32>
      %176 = arith.truncf %175 : vector<8x32xf32> to vector<8x32xbf16>
      %c0_106 = arith.constant 0 : index
      %c0_107 = arith.constant 0 : index
      %177 = vector.load %arg4[%c0_106, %c0_107] : memref<32x32xbf16, #tpu.memory_space<vmem>>, vector<32x32xbf16>
      %cst_108 = arith.constant dense<0.000000e+00> : vector<8x32xf32>
      %178 = tpu.matmul %176, %177, %cst_108 {dimension_numbers = #tpu.dot_dimension_numbers<[1], [0], [0], [1], [0, 0, 1, 1], [], []>} : vector<8x32xbf16>, vector<32x32xbf16>, vector<8x32xf32> -> vector<8x32xf32>
      %c0_109 = arith.constant 0 : index
      %c0_110 = arith.constant 0 : index
      %179 = vector.load %arg5[%c0_109, %c0_110] : memref<1x32xf32, #tpu.memory_space<vmem>>, vector<1x32xf32>
      %180 = vector.broadcast %179 : vector<1x32xf32> to vector<8x32xf32>
      %181 = arith.addf %178, %180 : vector<8x32xf32>
      %c0_111 = arith.constant 0 : index
      %c0_112 = arith.constant 0 : index
      %c0_113 = arith.constant 0 : index
      %182 = vector.load %arg11[%c0_111, %c0_112, %c0_113] : memref<1x8x32xf32, #tpu.memory_space<vmem>>, vector<1x8x32xf32>
      %183 = vector.shape_cast %182 : vector<1x8x32xf32> to vector<8x32xf32>
      %184 = vector.shape_cast %181 : vector<8x32xf32> to vector<1x8x32xf32>
      tpu.vector_store %arg11[%c0_111, %c0_112, %c0_113], %184 {strides = array<i32>} : memref<1x8x32xf32, #tpu.memory_space<vmem>>, vector<1x8x32xf32>,
      %185 = arith.truncf %181 : vector<8x32xf32> to vector<8x32xbf16>
      %c0_114 = arith.constant 0 : index
      %c0_115 = arith.constant 0 : index
      %186 = vector.load %arg13[%c0_114, %c0_115] : memref<8x32xbf16, #tpu.memory_space<vmem>>, vector<8x32xbf16>
      tpu.vector_store %arg13[%c0_114, %c0_115], %185 {strides = array<i32>} : memref<8x32xbf16, #tpu.memory_space<vmem>>, vector<8x32xbf16>,
      %cst_116 = arith.constant 0xFF800000 : f32
      %187 = vector.broadcast %cst_116 : f32 to vector<4x8x1xf32>
      %c0_117 = arith.constant 0 : index
      %c0_118 = arith.constant 0 : index
      %c0_119 = arith.constant 0 : index
      %188 = vector.load %arg14[%c0_117, %c0_118, %c0_119] : memref<4x8x1xf32, #tpu.memory_space<vmem>>, vector<4x8x1xf32>
      tpu.vector_store %arg14[%c0_117, %c0_118, %c0_119], %187 {strides = array<i32>} : memref<4x8x1xf32, #tpu.memory_space<vmem>>, vector<4x8x1xf32>,
      %cst_120 = arith.constant 0.000000e+00 : f32
      %189 = vector.broadcast %cst_120 : f32 to vector<4x8x1xf32>
      %c0_121 = arith.constant 0 : index
      %c0_122 = arith.constant 0 : index
      %c0_123 = arith.constant 0 : index
      %190 = vector.load %arg15[%c0_121, %c0_122, %c0_123] : memref<4x8x1xf32, #tpu.memory_space<vmem>>, vector<4x8x1xf32>
      tpu.vector_store %arg15[%c0_121, %c0_122, %c0_123], %189 {strides = array<i32>} : memref<4x8x1xf32, #tpu.memory_space<vmem>>, vector<4x8x1xf32>,
      %cst_124 = arith.constant 0.000000e+00 : f32
      %191 = vector.broadcast %cst_124 : f32 to vector<4x8x8xf32>
      %c0_125 = arith.constant 0 : index
      %c0_126 = arith.constant 0 : index
      %c0_127 = arith.constant 0 : index
      %192 = vector.load %arg16[%c0_125, %c0_126, %c0_127] : memref<4x8x8xf32, #tpu.memory_space<vmem>>, vector<4x8x8xf32>
      tpu.vector_store %arg16[%c0_125, %c0_126, %c0_127], %191 {strides = array<i32>} : memref<4x8x8xf32, #tpu.memory_space<vmem>>, vector<4x8x8xf32>,
    } else {
    }
    %c0 = arith.constant 0 : index
    %c0_1 = arith.constant 0 : index
    %c0_2 = arith.constant 0 : index
    %3 = vector.load %arg3[%c0, %c0_1, %c0_2] : memref<1x8x32xf32, #tpu.memory_space<vmem>>, vector<1x8x32xf32>
    %4 = vector.shape_cast %3 : vector<1x8x32xf32> to vector<8x32xf32>
    %5 = arith.truncf %4 : vector<8x32xf32> to vector<8x32xbf16>
    %c0_3 = arith.constant 0 : index
    %c0_4 = arith.constant 0 : index
    %6 = vector.load %arg6[%c0_3, %c0_4] : memref<32x64xbf16, #tpu.memory_space<vmem>>, vector<32x64xbf16>
    %cst = arith.constant dense<0.000000e+00> : vector<8x64xf32>
    %7 = tpu.matmul %5, %6, %cst {dimension_numbers = #tpu.dot_dimension_numbers<[1], [0], [0], [1], [0, 0, 1, 1], [], []>} : vector<8x32xbf16>, vector<32x64xbf16>, vector<8x64xf32> -> vector<8x64xf32>
    %c0_5 = arith.constant 0 : index
    %c0_6 = arith.constant 0 : index
    %8 = vector.load %arg7[%c0_5, %c0_6] : memref<1x64xf32, #tpu.memory_space<vmem>>, vector<1x64xf32>
    %9 = vector.broadcast %8 : vector<1x64xf32> to vector<8x64xf32>
    %10 = arith.addf %7, %9 : vector<8x64xf32>
    %11 = vector.extract_strided_slice %10 {offsets = [0, 0], sizes = [8, 32], strides = [1, 1]} : vector<8x64xf32> to vector<8x32xf32>
    %12 = vector.extract_strided_slice %10 {offsets = [0, 32], sizes = [8, 32], strides = [1, 1]} : vector<8x64xf32> to vector<8x32xf32>
    %c0_7 = arith.constant 0 : index
    %c0_8 = arith.constant 0 : index
    %c0_9 = arith.constant 0 : index
    %13 = vector.load %arg12[%c0_7, %c0_8, %c0_9] : memref<1x8x32xf32, #tpu.memory_space<vmem>>, vector<1x8x32xf32>
    %14 = vector.shape_cast %13 : vector<1x8x32xf32> to vector<8x32xf32>
    %15 = vector.shape_cast %11 : vector<8x32xf32> to vector<1x8x32xf32>
    tpu.vector_store %arg12[%c0_7, %c0_8, %c0_9], %15 {strides = array<i32>} : memref<1x8x32xf32, #tpu.memory_space<vmem>>, vector<1x8x32xf32>,
    %16 = arith.truncf %11 : vector<8x32xf32> to vector<8x32xbf16>
    %17 = arith.truncf %12 : vector<8x32xf32> to vector<8x32xbf16>
    %c0_10 = arith.constant 0 : index
    %c0_11 = arith.constant 0 : index
    %18 = vector.load %arg13[%c0_10, %c0_11] : memref<8x32xbf16, #tpu.memory_space<vmem>>, vector<8x32xbf16>
    %19 = vector.extract_strided_slice %18 {offsets = [0, 0], sizes = [8, 8], strides = [1, 1]} : vector<8x32xbf16> to vector<8x8xbf16>
    %20 = vector.extract_strided_slice %16 {offsets = [0, 0], sizes = [8, 8], strides = [1, 1]} : vector<8x32xbf16> to vector<8x8xbf16>
    %cst_12 = arith.constant dense<0.000000e+00> : vector<8x8xf32>
    %21 = tpu.matmul %19, %20, %cst_12 {dimension_numbers = #tpu.dot_dimension_numbers<[1], [1], [0], [0], [0, 0, 1, 0], [], []>} : vector<8x8xbf16>, vector<8x8xbf16>, vector<8x8xf32> -> vector<8x8xf32>
    %cst_13 = arith.constant 0.353553385 : f32
    %22 = vector.broadcast %cst_13 : f32 to vector<8x8xf32>
    %23 = arith.mulf %21, %22 : vector<8x8xf32>
    %c0_14 = arith.constant 0 : index
    %c0_15 = arith.constant 0 : index
    %c0_16 = arith.constant 0 : index
    %24 = vector.load %arg14[%c0_14, %c0_15, %c0_16] : memref<4x8x1xf32, #tpu.memory_space<vmem>>, vector<1x8x1xf32>
    %25 = vector.shape_cast %24 : vector<1x8x1xf32> to vector<8x1xf32>
    %cst_17 = arith.constant dense<0xFF800000> : vector<8xf32>
    %26 = vector.multi_reduction <maximumf>, %23, %cst_17 [1] : vector<8x8xf32> to vector<8xf32>
    %27 = vector.shape_cast %26 : vector<8xf32> to vector<8x1xf32>
    %28 = arith.maximumf %25, %27 : vector<8x1xf32>
    %29 = arith.subf %25, %28 : vector<8x1xf32>
    %30 = math.exp %29 : vector<8x1xf32>
    %31 = vector.broadcast %28 : vector<8x1xf32> to vector<8x8xf32>
    %32 = arith.subf %23, %31 : vector<8x8xf32>
    %33 = math.exp %32 : vector<8x8xf32>
    %c0_18 = arith.constant 0 : index
    %c0_19 = arith.constant 0 : index
    %c0_20 = arith.constant 0 : index
    %34 = vector.load %arg15[%c0_18, %c0_19, %c0_20] : memref<4x8x1xf32, #tpu.memory_space<vmem>>, vector<1x8x1xf32>
    %35 = vector.shape_cast %34 : vector<1x8x1xf32> to vector<8x1xf32>
    %36 = arith.mulf %30, %35 : vector<8x1xf32>
    %cst_21 = arith.constant dense<0.000000e+00> : vector<8xf32>
    %37 = vector.multi_reduction <add>, %33, %cst_21 [1] : vector<8x8xf32> to vector<8xf32>
    %38 = vector.shape_cast %37 : vector<8xf32> to vector<8x1xf32>
    %39 = arith.addf %36, %38 : vector<8x1xf32>
    %c0_22 = arith.constant 0 : index
    %c0_23 = arith.constant 0 : index
    %c0_24 = arith.constant 0 : index
    %40 = vector.load %arg15[%c0_22, %c0_23, %c0_24] : memref<4x8x1xf32, #tpu.memory_space<vmem>>, vector<1x8x1xf32>
    %41 = vector.shape_cast %40 : vector<1x8x1xf32> to vector<8x1xf32>
    %42 = vector.shape_cast %39 : vector<8x1xf32> to vector<1x8x1xf32>
    tpu.vector_store %arg15[%c0_22, %c0_23, %c0_24], %42 {strides = array<i32>} : memref<4x8x1xf32, #tpu.memory_space<vmem>>, vector<1x8x1xf32>,
    %c0_25 = arith.constant 0 : index
    %c0_26 = arith.constant 0 : index
    %c0_27 = arith.constant 0 : index
    %43 = vector.load %arg16[%c0_25, %c0_26, %c0_27] : memref<4x8x8xf32, #tpu.memory_space<vmem>>, vector<1x8x8xf32>
    %44 = vector.shape_cast %43 : vector<1x8x8xf32> to vector<8x8xf32>
    %45 = vector.broadcast %30 : vector<8x1xf32> to vector<8x8xf32>
    %46 = arith.mulf %45, %44 : vector<8x8xf32>
    %47 = arith.truncf %33 : vector<8x8xf32> to vector<8x8xbf16>
    %48 = vector.extract_strided_slice %17 {offsets = [0, 0], sizes = [8, 8], strides = [1, 1]} : vector<8x32xbf16> to vector<8x8xbf16>
    %cst_28 = arith.constant dense<0.000000e+00> : vector<8x8xf32>
    %49 = tpu.matmul %47, %48, %cst_28 {dimension_numbers = #tpu.dot_dimension_numbers<[1], [0], [0], [1], [0, 0, 1, 1], [], []>} : vector<8x8xbf16>, vector<8x8xbf16>, vector<8x8xf32> -> vector<8x8xf32>
    %50 = arith.addf %46, %49 : vector<8x8xf32>
    %c0_29 = arith.constant 0 : index
    %c0_30 = arith.constant 0 : index
    %c0_31 = arith.constant 0 : index
    %51 = vector.load %arg16[%c0_29, %c0_30, %c0_31] : memref<4x8x8xf32, #tpu.memory_space<vmem>>, vector<1x8x8xf32>
    %52 = vector.shape_cast %51 : vector<1x8x8xf32> to vector<8x8xf32>
    %53 = vector.shape_cast %50 : vector<8x8xf32> to vector<1x8x8xf32>
    tpu.vector_store %arg16[%c0_29, %c0_30, %c0_31], %53 {strides = array<i32>} : memref<4x8x8xf32, #tpu.memory_space<vmem>>, vector<1x8x8xf32>,
    %c0_32 = arith.constant 0 : index
    %c0_33 = arith.constant 0 : index
    %c0_34 = arith.constant 0 : index
    %54 = vector.load %arg14[%c0_32, %c0_33, %c0_34] : memref<4x8x1xf32, #tpu.memory_space<vmem>>, vector<1x8x1xf32>
    %55 = vector.shape_cast %54 : vector<1x8x1xf32> to vector<8x1xf32>
    %56 = vector.shape_cast %28 : vector<8x1xf32> to vector<1x8x1xf32>
    tpu.vector_store %arg14[%c0_32, %c0_33, %c0_34], %56 {strides = array<i32>} : memref<4x8x1xf32, #tpu.memory_space<vmem>>, vector<1x8x1xf32>,
    %57 = vector.extract_strided_slice %18 {offsets = [0, 8], sizes = [8, 8], strides = [1, 1]} : vector<8x32xbf16> to vector<8x8xbf16>
    %58 = vector.extract_strided_slice %16 {offsets = [0, 8], sizes = [8, 8], strides = [1, 1]} : vector<8x32xbf16> to vector<8x8xbf16>
    %cst_35 = arith.constant dense<0.000000e+00> : vector<8x8xf32>
    %59 = tpu.matmul %57, %58, %cst_35 {dimension_numbers = #tpu.dot_dimension_numbers<[1], [1], [0], [0], [0, 0, 1, 0], [], []>} : vector<8x8xbf16>, vector<8x8xbf16>, vector<8x8xf32> -> vector<8x8xf32>
    %cst_36 = arith.constant 0.353553385 : f32
    %60 = vector.broadcast %cst_36 : f32 to vector<8x8xf32>
    %61 = arith.mulf %59, %60 : vector<8x8xf32>
    %c1 = arith.constant 1 : index
    %c0_37 = arith.constant 0 : index
    %c0_38 = arith.constant 0 : index
    %62 = vector.load %arg14[%c1, %c0_37, %c0_38] : memref<4x8x1xf32, #tpu.memory_space<vmem>>, vector<1x8x1xf32>
    %63 = vector.shape_cast %62 : vector<1x8x1xf32> to vector<8x1xf32>
    %cst_39 = arith.constant dense<0xFF800000> : vector<8xf32>
    %64 = vector.multi_reduction <maximumf>, %61, %cst_39 [1] : vector<8x8xf32> to vector<8xf32>
    %65 = vector.shape_cast %64 : vector<8xf32> to vector<8x1xf32>
    %66 = arith.maximumf %63, %65 : vector<8x1xf32>
    %67 = arith.subf %63, %66 : vector<8x1xf32>
    %68 = math.exp %67 : vector<8x1xf32>
    %69 = vector.broadcast %66 : vector<8x1xf32> to vector<8x8xf32>
    %70 = arith.subf %61, %69 : vector<8x8xf32>
    %71 = math.exp %70 : vector<8x8xf32>
    %c1_40 = arith.constant 1 : index
    %c0_41 = arith.constant 0 : index
    %c0_42 = arith.constant 0 : index
    %72 = vector.load %arg15[%c1_40, %c0_41, %c0_42] : memref<4x8x1xf32, #tpu.memory_space<vmem>>, vector<1x8x1xf32>
    %73 = vector.shape_cast %72 : vector<1x8x1xf32> to vector<8x1xf32>
    %74 = arith.mulf %68, %73 : vector<8x1xf32>
    %cst_43 = arith.constant dense<0.000000e+00> : vector<8xf32>
    %75 = vector.multi_reduction <add>, %71, %cst_43 [1] : vector<8x8xf32> to vector<8xf32>
    %76 = vector.shape_cast %75 : vector<8xf32> to vector<8x1xf32>
    %77 = arith.addf %74, %76 : vector<8x1xf32>
    %c1_44 = arith.constant 1 : index
    %c0_45 = arith.constant 0 : index
    %c0_46 = arith.constant 0 : index
    %78 = vector.load %arg15[%c1_44, %c0_45, %c0_46] : memref<4x8x1xf32, #tpu.memory_space<vmem>>, vector<1x8x1xf32>
    %79 = vector.shape_cast %78 : vector<1x8x1xf32> to vector<8x1xf32>
    %80 = vector.shape_cast %77 : vector<8x1xf32> to vector<1x8x1xf32>
    tpu.vector_store %arg15[%c1_44, %c0_45, %c0_46], %80 {strides = array<i32>} : memref<4x8x1xf32, #tpu.memory_space<vmem>>, vector<1x8x1xf32>,
    %c1_47 = arith.constant 1 : index
    %c0_48 = arith.constant 0 : index
    %c0_49 = arith.constant 0 : index
    %81 = vector.load %arg16[%c1_47, %c0_48, %c0_49] : memref<4x8x8xf32, #tpu.memory_space<vmem>>, vector<1x8x8xf32>
    %82 = vector.shape_cast %81 : vector<1x8x8xf32> to vector<8x8xf32>
    %83 = vector.broadcast %68 : vector<8x1xf32> to vector<8x8xf32>
    %84 = arith.mulf %83, %82 : vector<8x8xf32>
    %85 = arith.truncf %71 : vector<8x8xf32> to vector<8x8xbf16>
    %86 = vector.extract_strided_slice %17 {offsets = [0, 8], sizes = [8, 8], strides = [1, 1]} : vector<8x32xbf16> to vector<8x8xbf16>
    %cst_50 = arith.constant dense<0.000000e+00> : vector<8x8xf32>
    %87 = tpu.matmul %85, %86, %cst_50 {dimension_numbers = #tpu.dot_dimension_numbers<[1], [0], [0], [1], [0, 0, 1, 1], [], []>} : vector<8x8xbf16>, vector<8x8xbf16>, vector<8x8xf32> -> vector<8x8xf32>
    %88 = arith.addf %84, %87 : vector<8x8xf32>
    %c1_51 = arith.constant 1 : index
    %c0_52 = arith.constant 0 : index
    %c0_53 = arith.constant 0 : index
    %89 = vector.load %arg16[%c1_51, %c0_52, %c0_53] : memref<4x8x8xf32, #tpu.memory_space<vmem>>, vector<1x8x8xf32>
    %90 = vector.shape_cast %89 : vector<1x8x8xf32> to vector<8x8xf32>
    %91 = vector.shape_cast %88 : vector<8x8xf32> to vector<1x8x8xf32>
    tpu.vector_store %arg16[%c1_51, %c0_52, %c0_53], %91 {strides = array<i32>} : memref<4x8x8xf32, #tpu.memory_space<vmem>>, vector<1x8x8xf32>,
    %c1_54 = arith.constant 1 : index
    %c0_55 = arith.constant 0 : index
    %c0_56 = arith.constant 0 : index
    %92 = vector.load %arg14[%c1_54, %c0_55, %c0_56] : memref<4x8x1xf32, #tpu.memory_space<vmem>>, vector<1x8x1xf32>
    %93 = vector.shape_cast %92 : vector<1x8x1xf32> to vector<8x1xf32>
    %94 = vector.shape_cast %66 : vector<8x1xf32> to vector<1x8x1xf32>
    tpu.vector_store %arg14[%c1_54, %c0_55, %c0_56], %94 {strides = array<i32>} : memref<4x8x1xf32, #tpu.memory_space<vmem>>, vector<1x8x1xf32>,
    %95 = vector.extract_strided_slice %18 {offsets = [0, 16], sizes = [8, 8], strides = [1, 1]} : vector<8x32xbf16> to vector<8x8xbf16>
    %96 = vector.extract_strided_slice %16 {offsets = [0, 16], sizes = [8, 8], strides = [1, 1]} : vector<8x32xbf16> to vector<8x8xbf16>
    %cst_57 = arith.constant dense<0.000000e+00> : vector<8x8xf32>
    %97 = tpu.matmul %95, %96, %cst_57 {dimension_numbers = #tpu.dot_dimension_numbers<[1], [1], [0], [0], [0, 0, 1, 0], [], []>} : vector<8x8xbf16>, vector<8x8xbf16>, vector<8x8xf32> -> vector<8x8xf32>
    %cst_58 = arith.constant 0.353553385 : f32
    %98 = vector.broadcast %cst_58 : f32 to vector<8x8xf32>
    %99 = arith.mulf %97, %98 : vector<8x8xf32>
    %c2 = arith.constant 2 : index
    %c0_59 = arith.constant 0 : index
    %c0_60 = arith.constant 0 : index
    %100 = vector.load %arg14[%c2, %c0_59, %c0_60] : memref<4x8x1xf32, #tpu.memory_space<vmem>>, vector<1x8x1xf32>
    %101 = vector.shape_cast %100 : vector<1x8x1xf32> to vector<8x1xf32>
    %cst_61 = arith.constant dense<0xFF800000> : vector<8xf32>
    %102 = vector.multi_reduction <maximumf>, %99, %cst_61 [1] : vector<8x8xf32> to vector<8xf32>
    %103 = vector.shape_cast %102 : vector<8xf32> to vector<8x1xf32>
    %104 = arith.maximumf %101, %103 : vector<8x1xf32>
    %105 = arith.subf %101, %104 : vector<8x1xf32>
    %106 = math.exp %105 : vector<8x1xf32>
    %107 = vector.broadcast %104 : vector<8x1xf32> to vector<8x8xf32>
    %108 = arith.subf %99, %107 : vector<8x8xf32>
    %109 = math.exp %108 : vector<8x8xf32>
    %c2_62 = arith.constant 2 : index
    %c0_63 = arith.constant 0 : index
    %c0_64 = arith.constant 0 : index
    %110 = vector.load %arg15[%c2_62, %c0_63, %c0_64] : memref<4x8x1xf32, #tpu.memory_space<vmem>>, vector<1x8x1xf32>
    %111 = vector.shape_cast %110 : vector<1x8x1xf32> to vector<8x1xf32>
    %112 = arith.mulf %106, %111 : vector<8x1xf32>
    %cst_65 = arith.constant dense<0.000000e+00> : vector<8xf32>
    %113 = vector.multi_reduction <add>, %109, %cst_65 [1] : vector<8x8xf32> to vector<8xf32>
    %114 = vector.shape_cast %113 : vector<8xf32> to vector<8x1xf32>
    %115 = arith.addf %112, %114 : vector<8x1xf32>
    %c2_66 = arith.constant 2 : index
    %c0_67 = arith.constant 0 : index
    %c0_68 = arith.constant 0 : index
    %116 = vector.load %arg15[%c2_66, %c0_67, %c0_68] : memref<4x8x1xf32, #tpu.memory_space<vmem>>, vector<1x8x1xf32>
    %117 = vector.shape_cast %116 : vector<1x8x1xf32> to vector<8x1xf32>
    %118 = vector.shape_cast %115 : vector<8x1xf32> to vector<1x8x1xf32>
    tpu.vector_store %arg15[%c2_66, %c0_67, %c0_68], %118 {strides = array<i32>} : memref<4x8x1xf32, #tpu.memory_space<vmem>>, vector<1x8x1xf32>,
    %c2_69 = arith.constant 2 : index
    %c0_70 = arith.constant 0 : index
    %c0_71 = arith.constant 0 : index
    %119 = vector.load %arg16[%c2_69, %c0_70, %c0_71] : memref<4x8x8xf32, #tpu.memory_space<vmem>>, vector<1x8x8xf32>
    %120 = vector.shape_cast %119 : vector<1x8x8xf32> to vector<8x8xf32>
    %121 = vector.broadcast %106 : vector<8x1xf32> to vector<8x8xf32>
    %122 = arith.mulf %121, %120 : vector<8x8xf32>
    %123 = arith.truncf %109 : vector<8x8xf32> to vector<8x8xbf16>
    %124 = vector.extract_strided_slice %17 {offsets = [0, 16], sizes = [8, 8], strides = [1, 1]} : vector<8x32xbf16> to vector<8x8xbf16>
    %cst_72 = arith.constant dense<0.000000e+00> : vector<8x8xf32>
    %125 = tpu.matmul %123, %124, %cst_72 {dimension_numbers = #tpu.dot_dimension_numbers<[1], [0], [0], [1], [0, 0, 1, 1], [], []>} : vector<8x8xbf16>, vector<8x8xbf16>, vector<8x8xf32> -> vector<8x8xf32>
    %126 = arith.addf %122, %125 : vector<8x8xf32>
    %c2_73 = arith.constant 2 : index
    %c0_74 = arith.constant 0 : index
    %c0_75 = arith.constant 0 : index
    %127 = vector.load %arg16[%c2_73, %c0_74, %c0_75] : memref<4x8x8xf32, #tpu.memory_space<vmem>>, vector<1x8x8xf32>
    %128 = vector.shape_cast %127 : vector<1x8x8xf32> to vector<8x8xf32>
    %129 = vector.shape_cast %126 : vector<8x8xf32> to vector<1x8x8xf32>
    tpu.vector_store %arg16[%c2_73, %c0_74, %c0_75], %129 {strides = array<i32>} : memref<4x8x8xf32, #tpu.memory_space<vmem>>, vector<1x8x8xf32>,
    %c2_76 = arith.constant 2 : index
    %c0_77 = arith.constant 0 : index
    %c0_78 = arith.constant 0 : index
    %130 = vector.load %arg14[%c2_76, %c0_77, %c0_78] : memref<4x8x1xf32, #tpu.memory_space<vmem>>, vector<1x8x1xf32>
    %131 = vector.shape_cast %130 : vector<1x8x1xf32> to vector<8x1xf32>
    %132 = vector.shape_cast %104 : vector<8x1xf32> to vector<1x8x1xf32>
    tpu.vector_store %arg14[%c2_76, %c0_77, %c0_78], %132 {strides = array<i32>} : memref<4x8x1xf32, #tpu.memory_space<vmem>>, vector<1x8x1xf32>,
    %133 = vector.extract_strided_slice %18 {offsets = [0, 24], sizes = [8, 8], strides = [1, 1]} : vector<8x32xbf16> to vector<8x8xbf16>
    %134 = vector.extract_strided_slice %16 {offsets = [0, 24], sizes = [8, 8], strides = [1, 1]} : vector<8x32xbf16> to vector<8x8xbf16>
    %cst_79 = arith.constant dense<0.000000e+00> : vector<8x8xf32>
    %135 = tpu.matmul %133, %134, %cst_79 {dimension_numbers = #tpu.dot_dimension_numbers<[1], [1], [0], [0], [0, 0, 1, 0], [], []>} : vector<8x8xbf16>, vector<8x8xbf16>, vector<8x8xf32> -> vector<8x8xf32>
    %cst_80 = arith.constant 0.353553385 : f32
    %136 = vector.broadcast %cst_80 : f32 to vector<8x8xf32>
    %137 = arith.mulf %135, %136 : vector<8x8xf32>
    %c3 = arith.constant 3 : index
    %c0_81 = arith.constant 0 : index
    %c0_82 = arith.constant 0 : index
    %138 = vector.load %arg14[%c3, %c0_81, %c0_82] : memref<4x8x1xf32, #tpu.memory_space<vmem>>, vector<1x8x1xf32>
    %139 = vector.shape_cast %138 : vector<1x8x1xf32> to vector<8x1xf32>
    %cst_83 = arith.constant dense<0xFF800000> : vector<8xf32>
    %140 = vector.multi_reduction <maximumf>, %137, %cst_83 [1] : vector<8x8xf32> to vector<8xf32>
    %141 = vector.shape_cast %140 : vector<8xf32> to vector<8x1xf32>
    %142 = arith.maximumf %139, %141 : vector<8x1xf32>
    %143 = arith.subf %139, %142 : vector<8x1xf32>
    %144 = math.exp %143 : vector<8x1xf32>
    %145 = vector.broadcast %142 : vector<8x1xf32> to vector<8x8xf32>
    %146 = arith.subf %137, %145 : vector<8x8xf32>
    %147 = math.exp %146 : vector<8x8xf32>
    %c3_84 = arith.constant 3 : index
    %c0_85 = arith.constant 0 : index
    %c0_86 = arith.constant 0 : index
    %148 = vector.load %arg15[%c3_84, %c0_85, %c0_86] : memref<4x8x1xf32, #tpu.memory_space<vmem>>, vector<1x8x1xf32>
    %149 = vector.shape_cast %148 : vector<1x8x1xf32> to vector<8x1xf32>
    %150 = arith.mulf %144, %149 : vector<8x1xf32>
    %cst_87 = arith.constant dense<0.000000e+00> : vector<8xf32>
    %151 = vector.multi_reduction <add>, %147, %cst_87 [1] : vector<8x8xf32> to vector<8xf32>
    %152 = vector.shape_cast %151 : vector<8xf32> to vector<8x1xf32>
    %153 = arith.addf %150, %152 : vector<8x1xf32>
    %c3_88 = arith.constant 3 : index
    %c0_89 = arith.constant 0 : index
    %c0_90 = arith.constant 0 : index
    %154 = vector.load %arg15[%c3_88, %c0_89, %c0_90] : memref<4x8x1xf32, #tpu.memory_space<vmem>>, vector<1x8x1xf32>
    %155 = vector.shape_cast %154 : vector<1x8x1xf32> to vector<8x1xf32>
    %156 = vector.shape_cast %153 : vector<8x1xf32> to vector<1x8x1xf32>
    tpu.vector_store %arg15[%c3_88, %c0_89, %c0_90], %156 {strides = array<i32>} : memref<4x8x1xf32, #tpu.memory_space<vmem>>, vector<1x8x1xf32>,
    %c3_91 = arith.constant 3 : index
    %c0_92 = arith.constant 0 : index
    %c0_93 = arith.constant 0 : index
    %157 = vector.load %arg16[%c3_91, %c0_92, %c0_93] : memref<4x8x8xf32, #tpu.memory_space<vmem>>, vector<1x8x8xf32>
    %158 = vector.shape_cast %157 : vector<1x8x8xf32> to vector<8x8xf32>
    %159 = vector.broadcast %144 : vector<8x1xf32> to vector<8x8xf32>
    %160 = arith.mulf %159, %158 : vector<8x8xf32>
    %161 = arith.truncf %147 : vector<8x8xf32> to vector<8x8xbf16>
    %162 = vector.extract_strided_slice %17 {offsets = [0, 24], sizes = [8, 8], strides = [1, 1]} : vector<8x32xbf16> to vector<8x8xbf16>
    %cst_94 = arith.constant dense<0.000000e+00> : vector<8x8xf32>
    %163 = tpu.matmul %161, %162, %cst_94 {dimension_numbers = #tpu.dot_dimension_numbers<[1], [0], [0], [1], [0, 0, 1, 1], [], []>} : vector<8x8xbf16>, vector<8x8xbf16>, vector<8x8xf32> -> vector<8x8xf32>
    %164 = arith.addf %160, %163 : vector<8x8xf32>
    %c3_95 = arith.constant 3 : index
    %c0_96 = arith.constant 0 : index
    %c0_97 = arith.constant 0 : index
    %165 = vector.load %arg16[%c3_95, %c0_96, %c0_97] : memref<4x8x8xf32, #tpu.memory_space<vmem>>, vector<1x8x8xf32>
    %166 = vector.shape_cast %165 : vector<1x8x8xf32> to vector<8x8xf32>
    %167 = vector.shape_cast %164 : vector<8x8xf32> to vector<1x8x8xf32>
    tpu.vector_store %arg16[%c3_95, %c0_96, %c0_97], %167 {strides = array<i32>} : memref<4x8x8xf32, #tpu.memory_space<vmem>>, vector<1x8x8xf32>,
    %c3_98 = arith.constant 3 : index
    %c0_99 = arith.constant 0 : index
    %c0_100 = arith.constant 0 : index
    %168 = vector.load %arg14[%c3_98, %c0_99, %c0_100] : memref<4x8x1xf32, #tpu.memory_space<vmem>>, vector<1x8x1xf32>
    %169 = vector.shape_cast %168 : vector<1x8x1xf32> to vector<8x1xf32>
    %170 = vector.shape_cast %142 : vector<8x1xf32> to vector<1x8x1xf32>
    tpu.vector_store %arg14[%c3_98, %c0_99, %c0_100], %170 {strides = array<i32>} : memref<4x8x1xf32, #tpu.memory_space<vmem>>, vector<1x8x1xf32>,
    %c0_i32_101 = arith.constant 0 : i32
    %171 = arith.cmpi eq, %arg1, %c0_i32_101 : i32
    %172 = arith.extui %171 : i1 to i32
    %c0_i32_102 = arith.constant 0 : i32
    %173 = arith.cmpi ne, %172, %c0_i32_102 : i32
    scf.if %173 {
      %cst_103 = arith.constant 0.000000e+00 : f32
      %174 = vector.broadcast %cst_103 : f32 to vector<8x32xf32>
      %c0_104 = arith.constant 0 : index
      %c0_105 = arith.constant 0 : index
      %c0_106 = arith.constant 0 : index
      %175 = vector.load %arg16[%c0_104, %c0_105, %c0_106] : memref<4x8x8xf32, #tpu.memory_space<vmem>>, vector<1x8x8xf32>
      %176 = vector.shape_cast %175 : vector<1x8x8xf32> to vector<8x8xf32>
      %c0_107 = arith.constant 0 : index
      %c0_108 = arith.constant 0 : index
      %c0_109 = arith.constant 0 : index
      %177 = vector.load %arg15[%c0_107, %c0_108, %c0_109] : memref<4x8x1xf32, #tpu.memory_space<vmem>>, vector<1x8x1xf32>
      %178 = vector.shape_cast %177 : vector<1x8x1xf32> to vector<8x1xf32>
      %179 = tpu.reciprocal %178 {approx = true} : vector<8x1xf32> -> vector<8x1xf32>
      %180 = vector.broadcast %179 : vector<8x1xf32> to vector<8x8xf32>
      %181 = arith.mulf %176, %180 : vector<8x8xf32>
      %182 = arith.truncf %181 : vector<8x8xf32> to vector<8x8xbf16>
      %c0_110 = arith.constant 0 : index
      %c0_111 = arith.constant 0 : index
      %183 = vector.load %arg8[%c0_110, %c0_111] : memref<32x32xbf16, #tpu.memory_space<vmem>>, vector<8x32xbf16>
      %cst_112 = arith.constant dense<0.000000e+00> : vector<8x32xf32>
      %184 = tpu.matmul %182, %183, %cst_112 {dimension_numbers = #tpu.dot_dimension_numbers<[1], [0], [0], [1], [0, 0, 1, 1], [], []>} : vector<8x8xbf16>, vector<8x32xbf16>, vector<8x32xf32> -> vector<8x32xf32>
      %185 = arith.addf %174, %184 : vector<8x32xf32>
      %c1_113 = arith.constant 1 : index
      %c0_114 = arith.constant 0 : index
      %c0_115 = arith.constant 0 : index
      %186 = vector.load %arg16[%c1_113, %c0_114, %c0_115] : memref<4x8x8xf32, #tpu.memory_space<vmem>>, vector<1x8x8xf32>
      %187 = vector.shape_cast %186 : vector<1x8x8xf32> to vector<8x8xf32>
      %c1_116 = arith.constant 1 : index
      %c0_117 = arith.constant 0 : index
      %c0_118 = arith.constant 0 : index
      %188 = vector.load %arg15[%c1_116, %c0_117, %c0_118] : memref<4x8x1xf32, #tpu.memory_space<vmem>>, vector<1x8x1xf32>
      %189 = vector.shape_cast %188 : vector<1x8x1xf32> to vector<8x1xf32>
      %190 = tpu.reciprocal %189 {approx = true} : vector<8x1xf32> -> vector<8x1xf32>
      %191 = vector.broadcast %190 : vector<8x1xf32> to vector<8x8xf32>
      %192 = arith.mulf %187, %191 : vector<8x8xf32>
      %193 = arith.truncf %192 : vector<8x8xf32> to vector<8x8xbf16>
      %c8 = arith.constant 8 : index
      %c0_119 = arith.constant 0 : index
      %194 = vector.load %arg8[%c8, %c0_119] : memref<32x32xbf16, #tpu.memory_space<vmem>>, vector<8x32xbf16>
      %cst_120 = arith.constant dense<0.000000e+00> : vector<8x32xf32>
      %195 = tpu.matmul %193, %194, %cst_120 {dimension_numbers = #tpu.dot_dimension_numbers<[1], [0], [0], [1], [0, 0, 1, 1], [], []>} : vector<8x8xbf16>, vector<8x32xbf16>, vector<8x32xf32> -> vector<8x32xf32>
      %196 = arith.addf %185, %195 : vector<8x32xf32>
      %c2_121 = arith.constant 2 : index
      %c0_122 = arith.constant 0 : index
      %c0_123 = arith.constant 0 : index
      %197 = vector.load %arg16[%c2_121, %c0_122, %c0_123] : memref<4x8x8xf32, #tpu.memory_space<vmem>>, vector<1x8x8xf32>
      %198 = vector.shape_cast %197 : vector<1x8x8xf32> to vector<8x8xf32>
      %c2_124 = arith.constant 2 : index
      %c0_125 = arith.constant 0 : index
      %c0_126 = arith.constant 0 : index
      %199 = vector.load %arg15[%c2_124, %c0_125, %c0_126] : memref<4x8x1xf32, #tpu.memory_space<vmem>>, vector<1x8x1xf32>
      %200 = vector.shape_cast %199 : vector<1x8x1xf32> to vector<8x1xf32>
      %201 = tpu.reciprocal %200 {approx = true} : vector<8x1xf32> -> vector<8x1xf32>
      %202 = vector.broadcast %201 : vector<8x1xf32> to vector<8x8xf32>
      %203 = arith.mulf %198, %202 : vector<8x8xf32>
      %204 = arith.truncf %203 : vector<8x8xf32> to vector<8x8xbf16>
      %c16 = arith.constant 16 : index
      %c0_127 = arith.constant 0 : index
      %205 = vector.load %arg8[%c16, %c0_127] : memref<32x32xbf16, #tpu.memory_space<vmem>>, vector<8x32xbf16>
      %cst_128 = arith.constant dense<0.000000e+00> : vector<8x32xf32>
      %206 = tpu.matmul %204, %205, %cst_128 {dimension_numbers = #tpu.dot_dimension_numbers<[1], [0], [0], [1], [0, 0, 1, 1], [], []>} : vector<8x8xbf16>, vector<8x32xbf16>, vector<8x32xf32> -> vector<8x32xf32>
      %207 = arith.addf %196, %206 : vector<8x32xf32>
      %c3_129 = arith.constant 3 : index
      %c0_130 = arith.constant 0 : index
      %c0_131 = arith.constant 0 : index
      %208 = vector.load %arg16[%c3_129, %c0_130, %c0_131] : memref<4x8x8xf32, #tpu.memory_space<vmem>>, vector<1x8x8xf32>
      %209 = vector.shape_cast %208 : vector<1x8x8xf32> to vector<8x8xf32>
      %c3_132 = arith.constant 3 : index
      %c0_133 = arith.constant 0 : index
      %c0_134 = arith.constant 0 : index
      %210 = vector.load %arg15[%c3_132, %c0_133, %c0_134] : memref<4x8x1xf32, #tpu.memory_space<vmem>>, vector<1x8x1xf32>
      %211 = vector.shape_cast %210 : vector<1x8x1xf32> to vector<8x1xf32>
      %212 = tpu.reciprocal %211 {approx = true} : vector<8x1xf32> -> vector<8x1xf32>
      %213 = vector.broadcast %212 : vector<8x1xf32> to vector<8x8xf32>
      %214 = arith.mulf %209, %213 : vector<8x8xf32>
      %215 = arith.truncf %214 : vector<8x8xf32> to vector<8x8xbf16>
      %c24 = arith.constant 24 : index
      %c0_135 = arith.constant 0 : index
      %216 = vector.load %arg8[%c24, %c0_135] : memref<32x32xbf16, #tpu.memory_space<vmem>>, vector<8x32xbf16>
      %cst_136 = arith.constant dense<0.000000e+00> : vector<8x32xf32>
      %217 = tpu.matmul %215, %216, %cst_136 {dimension_numbers = #tpu.dot_dimension_numbers<[1], [0], [0], [1], [0, 0, 1, 1], [], []>} : vector<8x8xbf16>, vector<8x32xbf16>, vector<8x32xf32> -> vector<8x32xf32>
      %218 = arith.addf %207, %217 : vector<8x32xf32>
      %c0_137 = arith.constant 0 : index
      %c0_138 = arith.constant 0 : index
      %219 = vector.load %arg9[%c0_137, %c0_138] : memref<1x32xf32, #tpu.memory_space<vmem>>, vector<1x32xf32>
      %220 = vector.broadcast %219 : vector<1x32xf32> to vector<8x32xf32>
      %221 = arith.addf %218, %220 : vector<8x32xf32>
      %c0_139 = arith.constant 0 : index
      %c0_140 = arith.constant 0 : index
      %c0_141 = arith.constant 0 : index
      %222 = vector.load %arg10[%c0_139, %c0_140, %c0_141] : memref<1x8x32xf32, #tpu.memory_space<vmem>>, vector<1x8x32xf32>
      %223 = vector.shape_cast %222 : vector<1x8x32xf32> to vector<8x32xf32>
      %224 = vector.shape_cast %221 : vector<8x32xf32> to vector<1x8x32xf32>
      tpu.vector_store %arg10[%c0_139, %c0_140, %c0_141], %224 {strides = array<i32>} : memref<1x8x32xf32, #tpu.memory_space<vmem>>, vector<1x8x32xf32>,
    } else {
    }
    return
  }
  func.func @transform_0(%arg0: i32, %arg1: i32) -> (i32, i32, i32) {
    %c0_i32 = arith.constant 0 : i32
    %c0_i32_0 = arith.constant 0 : i32
    %c0_i32_1 = arith.constant 0 : i32
    return %arg0, %c0_i32, %c0_i32_0 : i32, i32, i32
  }
  func.func @transform_1(%arg0: i32, %arg1: i32) -> (i32, i32, i32) {
    %c0_i32 = arith.constant 0 : i32
    %c0_i32_0 = arith.constant 0 : i32
    return %arg0, %arg1, %c0_i32 : i32, i32, i32
  }
  func.func @transform_2(%arg0: i32, %arg1: i32) -> (i32, i32) {
    %c0_i32 = arith.constant 0 : i32
    %c0_i32_0 = arith.constant 0 : i32
    %c0_i32_1 = arith.constant 0 : i32
    return %c0_i32, %c0_i32_0 : i32, i32
  }
  func.func @transform_3(%arg0: i32, %arg1: i32) -> (i32, i32) {
    %c0_i32 = arith.constant 0 : i32
    %c0_i32_0 = arith.constant 0 : i32
    %c0_i32_1 = arith.constant 0 : i32
    return %c0_i32, %c0_i32_0 : i32, i32
  }
  func.func @transform_4(%arg0: i32, %arg1: i32) -> (i32, i32) {
    %c0_i32 = arith.constant 0 : i32
    %c0_i32_0 = arith.constant 0 : i32
    %c0_i32_1 = arith.constant 0 : i32
    return %c0_i32, %c0_i32_0 : i32, i32
  }
  func.func @transform_5(%arg0: i32, %arg1: i32) -> (i32, i32) {
    %c0_i32 = arith.constant 0 : i32
    %c0_i32_0 = arith.constant 0 : i32
    %c0_i32_1 = arith.constant 0 : i32
    return %c0_i32, %c0_i32_0 : i32, i32
  }
  func.func @transform_6(%arg0: i32, %arg1: i32) -> (i32, i32) {
    %c0_i32 = arith.constant 0 : i32
    %c0_i32_0 = arith.constant 0 : i32
    %c0_i32_1 = arith.constant 0 : i32
    return %c0_i32, %c0_i32_0 : i32, i32
  }
  func.func @transform_7(%arg0: i32, %arg1: i32) -> (i32, i32) {
    %c0_i32 = arith.constant 0 : i32
    %c0_i32_0 = arith.constant 0 : i32
    %c0_i32_1 = arith.constant 0 : i32
    return %c0_i32, %c0_i32_0 : i32, i32
  }
  func.func @transform_8(%arg0: i32, %arg1: i32) -> (i32, i32, i32) {
    %c0_i32 = arith.constant 0 : i32
    %c0_i32_0 = arith.constant 0 : i32
    %c0_i32_1 = arith.constant 0 : i32
    return %arg0, %c0_i32, %c0_i32_0 : i32, i32, i32
  }
  func.func @transform_9(%arg0: i32, %arg1: i32) -> (i32, i32, i32) {
    %c0_i32 = arith.constant 0 : i32
    %c0_i32_0 = arith.constant 0 : i32
    %c0_i32_1 = arith.constant 0 : i32
    return %arg0, %c0_i32, %c0_i32_0 : i32, i32, i32
  }
  func.func @transform_10(%arg0: i32, %arg1: i32) -> (i32, i32, i32) {
    %c0_i32 = arith.constant 0 : i32
    %c0_i32_0 = arith.constant 0 : i32
    return %arg0, %arg1, %c0_i32 : i32, i32, i32
  }
}

</mosaic_0001>

<bundles_post_ra>
// kernel: cross_attention.1
= control target key start
LH: loop header
LB: loop body
LE: loop exit
PB: predicated region body
PF: predicated region fallthrough
CT: control target
= control target key end

     0   :  { %s1821_s0 = inlined_call_operand.vmem [shape: f32[2,8,32], index: 0, kind: input, shape index: {}]   ;;  %s1822_s1 = inlined_call_operand.vmem [shape: f32[2,8,32], index: 1, kind: input, shape index: {}]   ;;  %s1823_s2 = inlined_call_operand.vmem [shape: bf16[32,32], index: 2, kind: input, shape index: {}]   ;;  %s1824_s3 = inlined_call_operand.vmem [shape: f32[1,32], index: 3, kind: input, shape index: {}]   ;;  %s1825_s4 = inlined_call_operand.vmem [shape: bf16[32,64], index: 4, kind: input, shape index: {}]   ;;  %s1826_s5 = inlined_call_operand.vmem [shape: f32[1,64], index: 5, kind: input, shape index: {}]   ;;  %s1827_s6 = inlined_call_operand.vmem [shape: bf16[32,32], index: 6, kind: input, shape index: {}]   ;;  %s1828_s7 = inlined_call_operand.vmem [shape: f32[1,32], index: 7, kind: input, shape index: {}]   ;;  %s1829_s8 = inlined_call_operand.hbm [shape: f32[2,8,32], index: 8, kind: output, shape index: {0}]   ;;  %s1830_s9 = inlined_call_operand.hbm [shape: f32[2,8,32], index: 9, kind: output, shape index: {1}]   ;;  %s1831_s10 = inlined_call_operand.hbm [shape: f32[2,8,32], index: 10, kind: output, shape index: {2}]  }
   0x1   :  { %1839 = sst [smem:[#allocation15_spill]] %s1821_s0 }
   0x2   :  { %1840 = sst [smem:[#allocation16_spill]] %s1822_s1 }
   0x3   :  { %1841 = sst [smem:[#allocation17_spill]] %s1823_s2 }
   0x4   :  { %16 = vsyncpa [#allocation7], 0 }
   0x5   :  { %18 = vsyncpa [#allocation7 + $0x1], 0 }
   0x6   :  { %19 = vsyncpa [#allocation9], 0 }
   0x7   :  { %21 = vsyncpa [#allocation9 + $0x1], 0  ;;  %s1543_s13 = smov 0   ;;  %s1545_s14 = smov 0  }
   0x8   :  { %s1547_s15 = smov 0   ;;  %s1549_s16 = smov 0  }
   0x9   :  { %s1551_s17 = smov 0   ;;  %s1553_s18 = smov 0  }
   0xa LB: > { %1842 = sst [smem:[#allocation13_spill]] %s1472_s17  ;;  %s1833_s19 = sadd.s32 4294967295, %s1476_s18   ;;  %s1476_s18 = sphi %s1553_s18, %s27_s18   ;;  %s1472_s17 = sphi %s1551_s17, %s1855_s17   ;;  %s1468_s16 = sphi %s1549_s16, %s1854_s16   ;;  %s1464_s15 = sphi %s1547_s15, %s1858_s15   ;;  %s1460_s14 = sphi %s1545_s14, %s1857_s14   ;;  %s1456_s13 = sphi %s1543_s13, %s1856_s13  }
   0xb   : > { %s1832_s20 = sadd.s32 4294967294, %s1476_s18   ;;  %s39_s21 = sadd.s32 1, %s1472_s17 }
   0xc   : > { %s226_s22 = sadd.s32 1, %s1464_s15  ;;  %p41_p0 = scmp.ge.s32.totalorder %s39_s21, 2 }
   0xd   : > { %p236_p1 = scmp.ne.s32.totalorder %s1464_s15, %s1460_s14  ;;  %p237_p2 = scmp.eq.s32.totalorder %s1833_s19, 1 }
   0xe   : > { %p242_p3 = scmp.ne.s32.totalorder %s1460_s14, %s1456_s13  ;;  %s1860_s21 = smov (%p41_p0, %s39_s21), 0 }
   0xf   : > { %1843 = sst [smem:[#allocation14_spill]] %s1860_s21  ;;  %p1585_p4 = por %p237_p2, %p236_p1 }
  0x10   : > { %p243_p5 = scmp.eq.s32.totalorder %s1832_s20, 1  ;;  %s223_s24 = ssub.s32 %s1472_s17, %s1860_s21 }
  0x11   : > { %p1185_p6 = scmp.ge.s32.totalorder %s1476_s18, 1  ;;  %p224_p7 = scmp.eq.s32.totalorder %s223_s24, 0 }
  0x12   : > { %p1594_p8 = por %p243_p5, %p242_p3  ;;  %p350_p9 = scmp.lt.s32.totalorder %s1476_s18, 3 }
  0x13   : > { %s1600_s26 = scalar_select %p224_p7, %s1464_s15, %s226_s22  }
  0x14   : > { %p351_p10 = pnand %p1185_p6, %p350_p9 }
  0x15   : > { %s1846_s2 = sld [smem:[#allocation17_spill]] (!%p351_p10)  ;;  %p404_p11 = scmp.lt.s32.totalorder (!%p351_p10), %s1468_s16, 1 }
  0x16   : > { %354 = sbr.rel (%p351_p10) target bundleno = 1329 (0x531), region = 52  ;;  %s1847_s0 = sld [smem:[#allocation15_spill]] (!%p351_p10) }
  0x17   : > { %s1848_s1 = sld [smem:[#allocation16_spill]] (!%p351_p10)  ;;  %s1836_s11 = sand.u32 (!%p351_p10), 1, %s1460_s14  }
  0x18   : > { %s1630_s19 = sshll.u32 (!%p351_p10), %s1836_s11, 3  ;;  %s1481_s30 = smov (!%p351_p10), 112  }
  0x19   : > { %s396_s24 = scalar_lea.vmem (!%p351_p10), [#allocation8], %s1630_s19  ;;  %s1485_s12 = smov (!%p351_p10), 72  }
  0x1a   : > { %s1486_s22 = smov (!%p351_p10), 80   ;;  %s1487_s20 = smov (!%p351_p10), 88  }
  0x1b   : > { %v1230_v0 = vld [vmem:[%s1846_s2 + $0x8] sm:$0xff]  ;;  %v1229_v2 = vld [vmem:[%s1846_s2] sm:$0xff]  ;;  %s405_s27 = scalar_select %p404_p11, %s1468_s16, 1  ;;  %vm442_vm0 = vcmask 261120   ;;  %vm461_vm1 = vcmask 257024   ;;  %vm472_vm2 = vcmask 64512  }
  0x1c   : > { %v1232_v1 = vld [vmem:[%s1825_s4 + $0x8] sm:$0xff]  ;;  %452 = vmatpush.bf16.msra.mxu0 %v1230_v0  ;;  %v1231_v3 = vld [vmem:[%s1825_s4] sm:$0xff]  ;;  %vm580_vm3 = vcmask 1043456   ;;  %vm463_vm4 = vcmask 7168   ;;  %v1482_v36 = vmov -inf   ;;  %v1483_v37 = vmov 0  }
  0x1d   : > { %509 = vmatpush.bf16.msra.mxu1 %v1232_v1  ;;  %s1189_s28 = sshll.u32 %s405_s27, 3  ;;  %v1311_v8 = vld [vmem:[%s1824_s3] ss:$0 sm:$0xff]  ;;  %s1478_s27 = smov 96   ;;  %464 = vst.msk [vmem:[#allocation3] sm:$0xff] %vm463_vm4, %v1482_v36  ;;  %1308 = vset.pattern.permute.xlu0 %v1483_v37  ;;  %v1484_v38 = vmov 0.0  }
  0x1e   : > { %s407_s29 = scalar_lea.vmem %s1847_s0, %s1189_s28  ;;  %s414_s17 = scalar_lea.vmem %s1848_s1, %s1189_s28  ;;  %v1312_v9 = vld [vmem:[%s1826_s5] ss:$0 sm:$0xff]  ;;  %465 = vst.msk [vmem:[#allocation3 + $0x8] sm:$0xff] %vm463_vm4, %v1482_v36  ;;  %1309 = vset.pattern.permute.xlu1 %v1483_v37  ;;  %1310 = vset.pattern.permute.xlu2 %v1483_v37 }
  0x1f   : > { %v420_v4 = vld [vmem:[%s407_s29] sm:$0xff]  ;;  %s1479_s28 = smov 120   ;;  %s1480_s29 = smov 104   ;;  %466 = vst.msk [vmem:[#allocation3 + $0x10] sm:$0xff] %vm463_vm4, %v1482_v36 }
  0x20   : > { %453 = vmatpush.bf16.msra.mxu0 %v1229_v2  ;;  %v477_v5 = vld [vmem:[%s414_s17] sm:$0xff]  ;;  %v421_v6 = vpack.c.bf16 %v420_v4, %v420_v4  ;;  %s1837_s17 = scalar_lea.vmem [#allocation10], %s1630_s19  ;;  %467 = vst.msk [vmem:[#allocation3 + $0x18] sm:$0xff] %vm463_vm4, %v1482_v36  ;;  %s1849_s21 = sadd.s32 4294967295, %s1476_s18  }
  0x21   : > { %510 = vmatpush.bf16.msra.mxu1 %v1231_v3  ;;  %v478_v7 = vpack.c.bf16 %v477_v5, %v477_v5  ;;  %470 = vst.msk [vmem:[#allocation4 + $0x10] sm:$0xff] %vm463_vm4, %v1484_v38  ;;  %s1358_s1 = scalar_lea.hbm %s1830_s9, 16 }
  0x22   : > { %468 = vst.msk [vmem:[#allocation4] sm:$0xff] %vm463_vm4, %v1484_v38 }
  0x23   : > { %1199 = vmatmul.msk.bf16.vlgmr.msra.gmra.mxu0 %vm442_vm0, %v421_v6  ;;  %469 = vst.msk [vmem:[#allocation4 + $0x8] sm:$0xff] %vm463_vm4, %v1484_v38 }
  0x24   : > { %1208 = vmatmul.msk.bf16.vlgmr.msra.gmra.mxu1 %vm442_vm0, %v478_v7  ;;  %471 = vst.msk [vmem:[#allocation4 + $0x18] sm:$0xff] %vm463_vm4, %v1484_v38  ;;  %v540_v43 = vld [vmem:[#allocation3] sm:$0xff] }
  0x25   : > { %473 = vst.msk [vmem:[#allocation5] sm:$0xff] %vm472_vm2, %v1484_v38 }
  0x26   : > { %474 = vst.msk [vmem:[#allocation5 + $0x8] sm:$0xff] %vm472_vm2, %v1484_v38  ;;  %v710_v49 = vld [vmem:[#allocation3 + $0x10] sm:$0xff] }
  0x27   : > { %475 = vst.msk [vmem:[#allocation5 + $0x10] sm:$0xff] %vm472_vm2, %v1484_v38 }
  0x28   : > { %476 = vst.msk [vmem:[#allocation5 + $0x18] sm:$0xff] %vm472_vm2, %v1484_v38 }
  0xa0   : > { %v455_v10 = vpop.f32.mrf.mxu0 }
  0xa1   : > { %v512_v11 = vpop.f32.mrf.mxu1  ;;  %v456_v12 = vadd.f32 %v1311_v8, %v455_v10 }
  0xa2   : > { %v513_v13 = vadd.f32 %v1312_v9, %v512_v11 }
  0xa3   : > { %v460_v14 = vpack.c.bf16 %v456_v12, %v456_v12  ;;  %459 = vst.msk [vmem:[%s396_s24] sm:$0xff] %vm442_vm0, %v456_v12 }
  0xa4   : > { %516 = vst.msk [vmem:[%s1837_s17] sm:$0xff] %vm442_vm0, %v513_v13  ;;  %v517_v15 = vpack.c.bf16 %v513_v13, %v513_v13 }
  0xa5   : > { %462 = vst.msk [vmem:[#allocation2] sm:$0xf] %vm461_vm1, %v460_v14 }
  0xa6   : > { %v524_v16 = vsel %vm472_vm2, %v517_v15, 0  ;;  %v573_v17 = vunpack.c.l.b16 %v517_v15  ;;  %v727_v15 = vld [vmem:[#allocation4 + $0x10] sm:$0xff] }
  0xa7   : > { %533 = vmatpush.bf16.xpose.msra.mxu2 %v524_v16 }
  0xa8   : > { %v1644_v18 = vpack.c.b16 %v573_v17, %v573_v17  ;;  %v457_v19 = vpop.f32.mrf.mxu0 }
  0xa9   : > { %v514_v20 = vpop.f32.mrf.mxu1 }
  0xaa   : > { %575 = vrot.lane.b32.xlu1 %v1644_v18, %s1478_s27  ;;  %v564_v20 = vld [vmem:[#allocation5] sm:$0xff]  ;;  %s1734_s27 = sand.u32 1, %s1849_s21  }
  0xab   : > { %s1838_s11 = scalar_lea.sflag [#allocation9], %s1734_s27 }
  0xac   : > { %v518_v21 = vld [vmem:[#allocation2] sm:$0xf] }
  0xad   : > { %v601_v22 = vunpack.c.l.b16 %v518_v21 }
  0xae   : > { %1209 = vmatmul.msk.bf16.vlgmr.msra.gmra.mxu2 %vm472_vm2, %v518_v21 }
  0xaf   : > { %v602_v23 = vpack.c.b16 %v601_v22, %v601_v22 }
  0xb1   : > { %603 = vrot.lane.b32.xlu2 %v602_v23, %s1479_s28 }
  0xb2   : > { %605 = vrot.lane.b32.xlu1 %v1644_v18, %s1479_s28  ;;  %s1737_s28 = sshll.u32 %s1468_s16, 3 }
  0xb9   : > { %687 = vrot.lane.b32.xlu2 %v1644_v18, %s1481_s30 }
  0xba   : > { %769 = vrot.lane.b32.xlu1 %v1644_v18, %s1480_s29 }
  0xc1   : > { %685 = vrot.lane.b32.xlu2 %v602_v23, %s1481_s30 }
  0xc2   : > { %767 = vrot.lane.b32.xlu1 %v602_v23, %s1480_s29 }
 0x10b   : > { %v1651_v24 = vpop.permute.xlu2 %603 }
 0x113   : > { %v688_v25 = vpop.permute.xlu2 %687 }
 0x114   : > { %v693_v26 = vsel %vm472_vm2, %v688_v25, 0 }
 0x115   : > { %702 = vmatpush.bf16.xpose.msrb.mxu1 %v693_v26 }
 0x11b   : > { %v686_v28 = vpop.permute.xlu2 %685 }
 0x11c   : > { %v576_v27 = vpop.permute.xlu1 %575  ;;  %1213 = vmatmul.msk.bf16.vlgmr.msrb.gmra.mxu1 %vm472_vm2, %v686_v28  ;;  %v792_v28 = vld [vmem:[#allocation3 + $0x18] sm:$0xff] }
 0x11d   : > { %v582_v29 = vsel %vm580_vm3, %v576_v27, 0 }
 0x11e   : > { %591 = vmatpush.bf16.msra.mxu3 %v582_v29 }
 0x124   : > { %v606_v30 = vpop.permute.xlu1 %605 }
 0x125   : > { %v611_v31 = vsel %vm472_vm2, %v606_v30, 0 }
 0x126   : > { %620 = vmatpush.bf16.xpose.msrb.mxu3 %v611_v31 }
 0x12c   : > { %v770_v47 = vpop.permute.xlu1 %769 }
 0x12d   : > { %v775_v58 = vsel %vm472_vm2, %v770_v47, 0 }
 0x131   : > { %v535_v32 = vpop.f32.mrf.mxu2 }
 0x132   : > { %v539_v33 = vmul.f32 0.35355338, %v535_v32 }
 0x134   : > { %v541_v34 = vsel %vm472_vm2, %v539_v33, -inf  ;;  %v768_v48 = vpop.permute.xlu1 %767 }
 0x135   : > { %542 = vmax.xlane.f32.xlu0 %v541_v34 }
 0x139   : > { %v537_v35 = vpop.f32.mrf.mxu2 }
 0x199   : > { %v704_v39 = vpop.f32.mrf.mxu1 }
 0x19a   : > { %v708_v40 = vmul.f32 0.35355338, %v704_v39 }
 0x19c   : > { %v711_v41 = vsel %vm472_vm2, %v708_v40, -inf }
 0x19d   : > { %712 = vmax.xlane.f32.xlu1 %v711_v41 }
 0x1a1   : > { %v706_v42 = vpop.f32.mrf.mxu1 }
 0x1a8   : > { %v543_v44 = vpop.xlane.xlu0 %542 }
 0x1a9   : > { %v544_v45 = vmax.f32 %v540_v43, %v543_v44 }
 0x1ab   : > { %v545_v46 = vsub.f32 %v540_v43, %v544_v45  ;;  %599 = vst.msk [vmem:[#allocation3] sm:$0xff] %vm463_vm4, %v544_v45  ;;  %550 = vperm.xlu0 %1308, %v544_v45  }
 0x1ad   : > { %v546_v0 = vmul.f32 1.442695, %v545_v46 }
 0x210   : > { %v713_v50 = vpop.xlane.xlu1 %712 }
 0x211   : > { %v714_v51 = vmax.f32 %v710_v49, %v713_v50 }
 0x213   : > { %v715_v52 = vsub.f32 %v710_v49, %v714_v51  ;;  %766 = vst.msk [vmem:[#allocation3 + $0x10] sm:$0xff] %vm463_vm4, %v714_v51  ;;  %720 = vperm.xlu1 %1309, %v714_v51  }
 0x215   : > { %v716_v12 = vmul.f32 1.442695, %v715_v52 }
 0x21b   : > { %825 = vrot.lane.b32.xlu1 %v1644_v18, %s1485_s12  ;;  %s1015_s12 = scalar_lea.hbm %s1830_s9, %s1737_s28 }
 0x21d   : > { %v551_v53 = vpop.permute.xlu0 %550 }
 0x21e   : > { %v553_v54 = vsub.f32 %v539_v33, %v551_v53 }
 0x220   : > { %v554_v55 = vmul.f32 1.442695, %v553_v54 }
 0x222   : > { %1314 = vpow2.f32 %v554_v55 }
 0x228   : > { %v1674_v56 = vpop.eup %1314 }
 0x229   : > { %v571_v57 = vpack.c.bf16 %v1674_v56, %v1674_v56  ;;  %v558_v35 = vsel %vm472_vm2, %v1674_v56, 0.0 }
 0x22b   : > { %1210 = vmatmul.msk.bf16.vlgmr.msra.gmra.mxu3 %vm472_vm2, %v571_v57  ;;  %v556_v57 = vld [vmem:[#allocation4] sm:$0xff] }
 0x22c   : > { %784 = vmatpush.bf16.xpose.msra.mxu3 %v775_v58 }
 0x23b   : > { %1211 = vmatmul.msk.bf16.vlgmr.msrb.gmra.mxu3 %vm472_vm2, %v1651_v24  ;;  %v628_v24 = vld [vmem:[#allocation3 + $0x8] sm:$0xff] }
 0x24b   : > { %1215 = vmatmul.msk.bf16.vlgmr.msra.gmra.mxu3 %vm472_vm2, %v768_v48 }
 0x285   : > { %v721_v59 = vpop.permute.xlu1 %720 }
 0x286   : > { %v723_v60 = vsub.f32 %v708_v40, %v721_v59 }
 0x288   : > { %v724_v61 = vmul.f32 1.442695, %v723_v60 }
 0x28a   : > { %1316 = vpow2.f32 %v724_v61 }
 0x28b   : > { %1318 = vpow2.f32 %v546_v0  ;;  %v645_v0 = vld [vmem:[#allocation4 + $0x8] sm:$0xff] }
 0x28c   : > { %1320 = vpow2.f32 %v716_v12 }
 0x28d   : > { %v826_v13 = vpop.permute.xlu1 %825 }
 0x28e   : > { %v831_v40 = vsel %vm580_vm3, %v826_v13, 0  ;;  %v735_v13 = vld [vmem:[#allocation5 + $0x10] sm:$0xff] }
 0x290   : > { %v1317_v62 = vpop.eup %1316 }
 0x291   : > { %v729_v63 = vsel %vm472_vm2, %v1317_v62, 0.0  ;;  %v1684_v1 = vpop.eup %1318  ;;  %v742_v34 = vpack.c.bf16 %v1317_v62, %v1317_v62 }
 0x292   : > { %730 = vadd.xlane.f32.xlu1 %v729_v63  ;;  %v1321_v14 = vpop.eup %1320  ;;  %v557_v58 = vmul.f32 %v1684_v1, %v556_v57 }
 0x293   : > { %v728_v16 = vmul.f32 %v1321_v14, %v727_v15 }
 0x2ab   : > { %567 = vperm.xlu1 %1309, %v1684_v1  }
 0x2ae   : > { %v593_v2 = vpop.f32.mrf.mxu3 }
 0x2b6   : > { %v595_v3 = vpop.f32.mrf.mxu3 }
 0x2be   : > { %v622_v4 = vpop.f32.mrf.mxu3 }
 0x2bf   : > { %v626_v5 = vmul.f32 0.35355338, %v622_v4 }
 0x2c1   : > { %v629_v6 = vsel %vm472_vm2, %v626_v5, -inf }
 0x2c2   : > { %630 = vmax.xlane.f32.xlu2 %v629_v6 }
 0x2c6   : > { %v624_v7 = vpop.f32.mrf.mxu3 }
 0x2ce   : > { %v786_v8 = vpop.f32.mrf.mxu3 }
 0x2cf   : > { %v790_v9 = vmul.f32 0.35355338, %v786_v8  ;;  %v809_v8 = vld [vmem:[#allocation4 + $0x18] sm:$0xff] }
 0x2d1   : > { %v793_v10 = vsel %vm472_vm2, %v790_v9, -inf }
 0x2d2   : > { %794 = vmax.xlane.f32.xlu0 %v793_v10 }
 0x2d6   : > { %v788_v11 = vpop.f32.mrf.mxu3 }
 0x2e6   : > { %743 = vrot.lane.b32.xlu0 %v1644_v18, %s1486_s22  ;;  %s1017_s22 = sshll.u32 %s396_s24, 4  ;;  %s1018_s22 = int_to_ptr.vmem [resolvable:$true] %s1017_s22 }
 0x305   : > { %v731_v17 = vpop.xlane.xlu1 %730 }
 0x306   : > { %v732_v19 = vadd.f32 %v731_v17, %v728_v16 }
 0x308   : > { %733 = vst.msk [vmem:[#allocation4 + $0x10] sm:$0xff] %vm463_vm4, %v732_v19  ;;  %v653_v19 = vld [vmem:[#allocation5 + $0x8] sm:$0xff] }
 0x30f   : > { %v913_v53 = vld [vmem:[#allocation4 + $0x10] sm:$0xff] }
 0x31d   : > { %v568_v21 = vpop.permute.xlu1 %567 }
 0x31e   : > { %v570_v22 = vmul.f32 %v568_v21, %v564_v20 }
 0x320   : > { %v597_v23 = vadd.f32 %v593_v2, %v570_v22  ;;  %v817_v22 = vld [vmem:[#allocation5 + $0x18] sm:$0xff] }
 0x322   : > { %598 = vst.msk [vmem:[#allocation5] sm:$0xff] %vm472_vm2, %v597_v23 }
 0x335   : > { %v631_v25 = vpop.xlane.xlu2 %630 }
 0x336   : > { %v632_v26 = vmax.f32 %v628_v24, %v631_v25 }
 0x338   : > { %v633_v27 = vsub.f32 %v628_v24, %v632_v26  ;;  %684 = vst.msk [vmem:[#allocation3 + $0x8] sm:$0xff] %vm463_vm4, %v632_v26  ;;  %638 = vperm.xlu2 %1310, %v632_v26  }
 0x33a   : > { %v634_v52 = vmul.f32 1.442695, %v633_v27 }
 0x340   : > { %661 = vrot.lane.b32.xlu2 %v1644_v18, %s1487_s20  ;;  %s1019_s20 = sshll.u32 %s1015_s12, 4  ;;  %s1020_s20 = int_to_ptr.hbm [resolvable:$true] %s1019_s20 }
 0x341   : > { %s1352_s17 = sshra.s32 %s1020_s20, 4  ;;  %s1353_s17 = int_to_ptr.hbm [resolvable:$true] %s1352_s17 }
 0x342   : > { %s1354_s0 = scalar_lea.hbm %s1353_s17, 8  ;;  %p1359_p1 = scmp.lt.s32.totalorder %s1353_s17, %s1830_s9 }
 0x343   : > { %p1355_p12 = scmp.ne.s32.totalorder %s1353_s17, %s1354_s0  ;;  %p1360_p2 = scmp.lt.s32.totalorder %s1358_s1, %s1354_s0 }
 0x345   : > { %v795_v29 = vpop.xlane.xlu0 %794  ;;  %p1356_p13 = pnand %p1355_p12, %p1585_p4  ;;  %p1361_p3 = por %p1360_p2, %p1359_p1 }
 0x346   : > { %v796_v30 = vmax.f32 %v792_v28, %v795_v29 }
 0x347   : > { %p1357_p0 = pneg %p1356_p13 }
 0x348   : > { %v797_v31 = vsub.f32 %v792_v28, %v796_v30  ;;  %848 = vst.msk [vmem:[#allocation3 + $0x18] sm:$0xff] %vm463_vm4, %v796_v30  ;;  %802 = vperm.xlu2 %1310, %v796_v30  }
 0x349   : > { %p1362_p5 = pnand %p1361_p3, %p1357_p0 }
 0x34a   : > { %v798_v50 = vmul.f32 1.442695, %v797_v31 }
 0x358   : > { %v744_v32 = vpop.permute.xlu0 %743 }
 0x359   : > { %v749_v33 = vsel %vm580_vm3, %v744_v32, 0 }
 0x35a   : > { %758 = vmatpush.bf16.msrb.mxu2 %v749_v33 }
 0x35d   : > { %1214 = vmatmul.msk.bf16.vlgmr.msrb.gmra.mxu2 %vm472_vm2, %v742_v34 }
 0x371   : > { %559 = vadd.xlane.f32.xlu2 %v558_v35  ;;  %v862_v35 = vld [vmem:[%s1827_s6] sm:$0xf] }
 0x392   : > { %v639_v36 = vpop.permute.xlu2 %638 }
 0x393   : > { %v641_v18 = vsub.f32 %v626_v5, %v639_v36  ;;  %v922_v5 = vld [vmem:[%s1827_s6 + $0x8] sm:$0xf]  ;;  %v897_v36 = vsel %vm580_vm3, %v862_v35, 0 }
 0x394   : > { %v927_v6 = vsel %vm580_vm3, %v922_v5, 0  ;;  %906 = vmatpush.bf16.msra.mxu2 %v897_v36 }
 0x395   : > { %v642_v37 = vmul.f32 1.442695, %v641_v18  ;;  %936 = vmatpush.bf16.msrb.mxu3 %v927_v6  ;;  %v852_v18 = vld [vmem:[#allocation5] sm:$0xff] }
 0x397   : > { %1322 = vpow2.f32 %v642_v37 }
 0x39a   : > { %v662_v38 = vpop.permute.xlu2 %661 }
 0x39b   : > { %v667_v39 = vsel %vm580_vm3, %v662_v38, 0 }
 0x39c   : > { %676 = vmatpush.bf16.msrb.mxu0 %v667_v39 }
 0x39d   : > { %v1323_v41 = vpop.eup %1322 }
 0x39e   : > { %v647_v42 = vsel %vm472_vm2, %v1323_v41, 0.0  ;;  %v660_v43 = vpack.c.bf16 %v1323_v41, %v1323_v41 }
 0x39f   : > { %648 = vadd.xlane.f32.xlu0 %v647_v42  ;;  %v953_v42 = vld [vmem:[%s1827_s6 + $0xc] sm:$0xf] }
 0x3a0   : > { %840 = vmatpush.bf16.msra.mxu0 %v831_v40  ;;  %v873_v40 = vld [vmem:[%s1827_s6 + $0x4] sm:$0xf] }
 0x3a1   : > { %1212 = vmatmul.msk.bf16.vlgmr.msrb.gmra.mxu0 %vm472_vm2, %v660_v43  ;;  %v878_v41 = vsel %vm580_vm3, %v873_v40, 0  ;;  %v958_v43 = vsel %vm580_vm3, %v953_v42, 0 }
 0x3a2   : > { %v803_v44 = vpop.permute.xlu2 %802  ;;  %887 = vmatpush.bf16.msra.mxu1 %v878_v41 }
 0x3a3   : > { %v805_v45 = vsub.f32 %v790_v9, %v803_v44 }
 0x3a4   : > { %967 = vmatpush.bf16.msrb.mxu0 %v958_v43 }
 0x3a5   : > { %v806_v46 = vmul.f32 1.442695, %v805_v45 }
 0x3a7   : > { %1324 = vpow2.f32 %v806_v46 }
 0x3a8   : > { %1326 = vpow2.f32 %v798_v50 }
 0x3a9   : > { %1328 = vpow2.f32 %v634_v52 }
 0x3aa   : > { %1330 = vrcp.f32 %v913_v53 }
 0x3ad   : > { %v1325_v47 = vpop.eup %1324 }
 0x3ae   : > { %v824_v48 = vpack.c.bf16 %v1325_v47, %v1325_v47  ;;  %v811_v49 = vsel %vm472_vm2, %v1325_v47, 0.0  ;;  %v1327_v51 = vpop.eup %1326 }
 0x3af   : > { %812 = vadd.xlane.f32.xlu2 %v811_v49  ;;  %v1329_v54 = vpop.eup %1328  ;;  %v810_v9 = vmul.f32 %v1327_v51, %v809_v8 }
 0x3b0   : > { %v1331_v55 = vpop.eup %1330  ;;  %v646_v2 = vmul.f32 %v1329_v54, %v645_v0 }
 0x3b1   : > { %1216 = vmatmul.msk.bf16.vlgmr.msra.gmra.mxu0 %vm472_vm2, %v824_v48 }
 0x3b3   : > { %738 = vperm.xlu0 %1308, %v1321_v14  }
 0x3bb   : > { %820 = vperm.xlu0 %1308, %v1327_v51  }
 0x3c7   : > { %656 = vperm.xlu2 %1310, %v1329_v54  }
 0x3cf   : > { %917 = vperm.xlu2 %1310, %v1331_v55  }
 0x3e0   : > { %v760_v56 = vpop.f32.mrf.mxu2 }
 0x3e4   : > { %v560_v59 = vpop.xlane.xlu2 %559 }
 0x3e5   : > { %v561_v60 = vadd.f32 %v560_v59, %v557_v58 }
 0x3e7   : > { %563 = vst.msk [vmem:[#allocation4] sm:$0xff] %vm463_vm4, %v561_v60 }
 0x3e8   : > { %v762_v61 = vpop.f32.mrf.mxu2 }
 0x3ee   : > { %v853_v62 = vld [vmem:[#allocation4] sm:$0xff] }
 0x3ef   : > { %1332 = vrcp.f32 %v853_v62 }
 0x3f5   : > { %v1333_v63 = vpop.eup %1332 }
 0x3f6   : > { %857 = vperm.xlu1 %1309, %v1333_v63  }
 0x412   : > { %v649_v3 = vpop.xlane.xlu0 %648 }
 0x413   : > { %v650_v4 = vadd.f32 %v649_v3, %v646_v2 }
 0x415   : > { %651 = vst.msk [vmem:[#allocation4 + $0x8] sm:$0xff] %vm463_vm4, %v650_v4 }
 0x41c   : > { %v864_v1 = vld [vmem:[#allocation4 + $0x8] sm:$0xff] }
 0x41d   : > { %1334 = vrcp.f32 %v864_v1 }
 0x41e   : > { %v678_v7 = vpop.f32.mrf.mxu0 }
 0x422   : > { %v813_v10 = vpop.xlane.xlu2 %812 }
 0x423   : > { %v1335_v11 = vpop.eup %1334  ;;  %v814_v12 = vadd.f32 %v813_v10, %v810_v9 }
 0x424   : > { %868 = vperm.xlu0 %1308, %v1335_v11  }
 0x425   : > { %815 = vst.msk [vmem:[#allocation4 + $0x18] sm:$0xff] %vm463_vm4, %v814_v12  ;;  %v739_v15 = vpop.permute.xlu0 %738 }
 0x426   : > { %v680_v14 = vpop.f32.mrf.mxu0  ;;  %v741_v16 = vmul.f32 %v739_v15, %v735_v13 }
 0x428   : > { %v764_v17 = vadd.f32 %v760_v56, %v741_v16 }
 0x42a   : > { %765 = vst.msk [vmem:[#allocation5 + $0x10] sm:$0xff] %vm472_vm2, %v764_v17  ;;  %v657_v20 = vpop.permute.xlu2 %656 }
 0x42b   : > { %v659_v21 = vmul.f32 %v657_v20, %v653_v19 }
 0x42c   : > { %v944_v23 = vld [vmem:[#allocation4 + $0x18] sm:$0xff] }
 0x42d   : > { %v682_v24 = vadd.f32 %v678_v7, %v659_v21  ;;  %v821_v26 = vpop.permute.xlu0 %820  ;;  %1336 = vrcp.f32 %v944_v23 }
 0x42e   : > { %v842_v25 = vpop.f32.mrf.mxu0  ;;  %v823_v27 = vmul.f32 %v821_v26, %v817_v22 }
 0x42f   : > { %683 = vst.msk [vmem:[#allocation5 + $0x8] sm:$0xff] %vm472_vm2, %v682_v24 }
 0x430   : > { %v846_v28 = vadd.f32 %v842_v25, %v823_v27 }
 0x431   : > { %v912_v29 = vld [vmem:[#allocation5 + $0x10] sm:$0xff] }
 0x432   : > { %847 = vst.msk [vmem:[#allocation5 + $0x18] sm:$0xff] %vm472_vm2, %v846_v28  ;;  %v918_v30 = vpop.permute.xlu2 %917 }
 0x433   : > { %v1337_v31 = vpop.eup %1336  ;;  %v920_v32 = vmul.f32 %v918_v30, %v912_v29 }
 0x434   : > { %948 = vperm.xlu1 %1309, %v1337_v31  }
 0x435   : > { %v921_v33 = vpack.c.bf16 %v920_v32, %v920_v32 }
 0x436   : > { %v844_v34 = vpop.f32.mrf.mxu0  ;;  %v863_v45 = vld [vmem:[#allocation5 + $0x8] sm:$0xff] }
 0x437   : > { %1219 = vmatmul.msk.bf16.vlgmr.msrb.gmra.mxu3 %vm472_vm2, %v921_v33 }
 0x439   : > { %v943_v48 = vld [vmem:[#allocation5 + $0x18] sm:$0xff] }
 0x468   : > { %v858_v37 = vpop.permute.xlu1 %857 }
 0x469   : > { %v860_v38 = vmul.f32 %v858_v37, %v852_v18 }
 0x46b   : > { %v861_v39 = vpack.c.bf16 %v860_v38, %v860_v38 }
 0x46d   : > { %1218 = vmatmul.msk.bf16.vlgmr.msra.gmra.mxu2 %vm472_vm2, %v861_v39 }
 0x496   : > { %v869_v44 = vpop.permute.xlu0 %868 }
 0x497   : > { %v871_v46 = vmul.f32 %v869_v44, %v863_v45 }
 0x499   : > { %v872_v47 = vpack.c.bf16 %v871_v46, %v871_v46 }
 0x49b   : > { %1217 = vmatmul.msk.bf16.vlgmr.msra.gmra.mxu1 %vm472_vm2, %v872_v47 }
 0x4a6   : > { %v949_v49 = vpop.permute.xlu1 %948 }
 0x4a7   : > { %v951_v50 = vmul.f32 %v949_v49, %v943_v48 }
 0x4a9   : > { %v952_v51 = vpack.c.bf16 %v951_v50, %v951_v50 }
 0x4ab   : > { %1220 = vmatmul.msk.bf16.vlgmr.msrb.gmra.mxu0 %vm472_vm2, %v952_v51 }
 0x4ac   : > { %1365 = shalt.err (!%p1362_p5)
}
 0x4ad   : > { %1234 = dma.vmem_to_hbm [thread:$0]  (%p1585_p4), %s1018_s22, 128, %s1020_s20, %s1838_s11  }
 0x4ae   : > { %s1030_s12 = scalar_lea.hbm %s1831_s10, %s1737_s28  ;;  %s1850_s16 = scalar_lea.vmem [#allocation10], %s1630_s19 }
 0x4af   : > { %s1032_s21 = sshll.u32 %s1850_s16, 4  ;;  %s1034_s2 = sshll.u32 %s1030_s12, 4  ;;  %s1033_s21 = int_to_ptr.vmem [resolvable:$true] %s1032_s21  ;;  %s1035_s2 = int_to_ptr.hbm [resolvable:$true] %s1034_s2 }
 0x4b0   : > { %s1380_s0 = sshra.s32 %s1035_s2, 4  ;;  %s1386_s22 = scalar_lea.hbm %s1831_s10, 16  ;;  %s1381_s0 = int_to_ptr.hbm [resolvable:$true] %s1380_s0 }
 0x4b1   : > { %s1382_s1 = scalar_lea.hbm %s1381_s0, 8  ;;  %p1387_p10 = scmp.lt.s32.totalorder %s1381_s0, %s1831_s10 }
 0x4b2   : > { %p1383_p6 = scmp.ne.s32.totalorder %s1381_s0, %s1382_s1  ;;  %p1388_p11 = scmp.lt.s32.totalorder %s1386_s22, %s1382_s1 }
 0x4b4   : > { %p1384_p7 = pnand %p1383_p6, %p1585_p4  ;;  %p1389_p12 = por %p1388_p11, %p1387_p10 }
 0x4b6   : > { %p1385_p9 = pneg %p1384_p7 }
 0x4b8   : > { %p1390_p13 = pnand %p1389_p12, %p1385_p9 }
 0x4ba   : > { %1393 = shalt.err (!%p1390_p13)
}
 0x4bb   : > { %s1851_s24 = scalar_lea.sflag [#allocation9], %s1734_s27  ;;  %v938_v52 = vpop.f32.mrf.mxu3  ;;  %s1001_s12 = scalar_lea.hbm %s1829_s8, %s1737_s28  ;;  %v1313_v60 = vld [vmem:[%s1828_s7] ss:$0 sm:$0xff] }
 0x4bc   : > { %1235 = dma.vmem_to_hbm [thread:$0]  (%p1585_p4), %s1033_s21, 128, %s1035_s2, %s1851_s24  }
 0x4bd   : > { %s389_s27 = scalar_lea.vmem [#allocation6], %s1630_s19  ;;  %s1005_s2 = sshll.u32 %s1001_s12, 4  ;;  %s1006_s2 = int_to_ptr.hbm [resolvable:$true] %s1005_s2 }
 0x4be   : > { %s1003_s21 = sshll.u32 %s389_s27, 4  ;;  %s1852_s1 = sand.u32 1, %s1460_s14   ;;  %s1004_s21 = int_to_ptr.vmem [resolvable:$true] %s1003_s21 }
 0x4bf   : > { %s981_s17 = scalar_lea.sflag [#allocation7], %s1852_s1  ;;  %s1408_s29 = sshra.s32 %s1006_s2, 4  ;;  %s1409_s29 = int_to_ptr.hbm [resolvable:$true] %s1408_s29 }
 0x4c0   : > { %s1410_s28 = scalar_lea.hbm %s1409_s29, 8  ;;  %s1414_s19 = scalar_lea.hbm %s1829_s8, 16 }
 0x4c1   : > { %p1411_p0 = scmp.ne.s32.totalorder %s1409_s29, %s1410_s28  ;;  %p1415_p3 = scmp.lt.s32.totalorder %s1409_s29, %s1829_s8 }
 0x4c2   : > { %p1416_p5 = scmp.lt.s32.totalorder %s1414_s19, %s1410_s28 }
 0x4c3   : > { %v940_v53 = vpop.f32.mrf.mxu3  ;;  %p1412_p1 = pnand %p1411_p0, %p1585_p4 }
 0x4c4   : > { %p1417_p6 = por %p1416_p5, %p1415_p3 }
 0x4c5   : > { %p1413_p2 = pneg %p1412_p1 }
 0x4c7   : > { %p1418_p7 = pnand %p1417_p6, %p1413_p2 }
 0x4f0   : > { %v908_v54 = vpop.f32.mrf.mxu2 }
 0x4f8   : > { %v910_v55 = vpop.f32.mrf.mxu2 }
 0x518   : > { %v889_v56 = vpop.f32.mrf.mxu1 }
 0x519   : > { %v909_v58 = vadd.f32 %v908_v54, %v889_v56 }
 0x51b   : > { %v942_v59 = vadd.f32 %v938_v52, %v909_v58 }
 0x520   : > { %v891_v57 = vpop.f32.mrf.mxu1 }
 0x528   : > { %v969_v61 = vpop.f32.mrf.mxu0 }
 0x529   : > { %v973_v62 = vadd.f32 %v969_v61, %v942_v59 }
 0x52b   : > { %v978_v63 = vadd.f32 %v1313_v60, %v973_v62 }
 0x52d   : > { %979 = vst.msk [vmem:[%s389_s27] sm:$0xff] %vm442_vm0, %v978_v63 }
 0x52e   : > { %1421 = shalt.err (!%p1418_p7)
}
 0x52f   : > { %1233 = dma.vmem_to_hbm [thread:$0]  (%p1585_p4), %s1004_s21, 128, %s1006_s2, %s981_s17  }
 0x530   : > { %v971_v0 = vpop.f32.mrf.mxu0 }
 0x531 PF: > { %p1249_p9 = scmp.ge.s32.totalorder %s1476_s18, 2  ;;  %s1046_s30 = sand.u32 1, %s1456_s13  }
 0x532   : > { %s1047_s12 = scalar_lea.sflag [#allocation7], %s1046_s30 }
 0x533   : > { %p1240_p10 = pnand %p1249_p9, %p1594_p8 }
 0x535   : > { %p1241_p11 = pneg %p1240_p10 }
 0x537   : > { %1447 = dma.done.wait (%p1241_p11), %s1047_s12, 128  }
 0x538   : > { %1449 = vsyncadd (%p1241_p11), %s1047_s12, 4294967168  ;;  %s1853_s16 = sadd.s32 4294967294, %s1476_s18  }
 0x539   : > { %s1056_s0 = sand.u32 1, %s1853_s16  }
 0x53a   : > { %s1057_s27 = scalar_lea.sflag [#allocation9], %s1056_s0 }
 0x53b   : > { %1451 = dma.done.wait (%p1241_p11), %s1057_s27, 256  }
 0x53c   : > { %1453 = vsyncadd (%p1241_p11), %s1057_s27, 4294967040  ;;  %s27_s18 = sadd.s32 1, %s1476_s18   ;;  %s1854_s16 = sld [smem:[#allocation13_spill]] }
 0x53d   : > { %p24_p4 = scmp.ge.s32.totalorder %s27_s18, 4   ;;  %s1855_s17 = sld [smem:[#allocation14_spill]] }
 0x53e   : > { %s1856_s13 = smov %s1460_s14  ;;  %s1857_s14 = smov %s1464_s15 }
 0x53f   : > { %s1858_s15 = smov %s1600_s26  ;;  %26 = sbr.rel (!%p24_p4) target bundleno = 10 (0xa), region = 139 }
 0x544   :  { %1073 = vsyncpa [#allocation7], 1 }
 0x545   :  { %1075 = vsyncpa [#allocation7 + $0x1], 1 }
 0x546   :  { %1076 = vsyncpa [#allocation9], 1 }
 0x547   :  { %1078 = vsyncpa [#allocation9 + $0x1], 1 }

</bundles_post_ra>
